<compile_context>
chip_gen: v6e
topology: v6e:2x2x1
jax: 0.10.0
libtpu: 0.0.40
codegen_flags: <defaults>
</compile_context>

<pallas_src>
import functools
import math

import jax
import jax.numpy as jnp
from jax.experimental import pallas as pl
from jax.experimental.pallas import tpu as pltpu


# -----------------------------------------------------------------------------
# Fused encoder kernel: grid = (batch_tiles, layers). The activation for one
# batch tile is resident in VMEM scratch across the layer axis; the output is
# written only on the last layer.
# -----------------------------------------------------------------------------
def encoder_kernel(
    x_ref, pe_ref,
    wq_ref, wk_ref, wv_ref, wo_ref,
    w1_ref, b1_ref, w2_ref, b2_ref,
    g1_ref, be1_ref, g2_ref, be2_ref,
    o_ref,
    act_ref,
    *, num_heads,
):
    layer = pl.program_id(1)
    Bb, S, D = act_ref.shape
    dk = D // num_heads
    scale = 1.0 / math.sqrt(dk)

    # --- layer 0: load activation and fuse the positional-encoding add ----------
    @pl.when(layer == 0)
    def _():
        act_ref[...] = x_ref[...] + pe_ref[...]        # (Bb,S,D) + (S,D) broadcast

    # flatten the batch tile for the 2-D (weight) matmuls: better MXU utilization,
    # leading-dim-only reshape (lane axis untouched, S multiple of 8) is free.
    x = act_ref[...].reshape(Bb * S, D)                # f32, resident across layers
    x_bf = x.astype(jnp.bfloat16)

    # --- multi-head self-attention (q = k = v = x, mask = None) -----------------
    # fold 1/sqrt(dk) into q once (Bb*S*D muls instead of H*Bb*S*S)
    q = jnp.dot(x_bf, wq_ref[...], preferred_element_type=jnp.float32) * scale
    k = jnp.dot(x_bf, wk_ref[...], preferred_element_type=jnp.float32)
    v = jnp.dot(x_bf, wv_ref[...], preferred_element_type=jnp.float32)
    q_bf = q.astype(jnp.bfloat16).reshape(Bb, S, D)
    k_bf = k.astype(jnp.bfloat16).reshape(Bb, S, D)
    v_bf = v.astype(jnp.bfloat16).reshape(Bb, S, D)
    wo = wo_ref[...]                                   # (D, D) bf16

    attn = jnp.zeros((Bb * S, D), jnp.float32)
    for h in range(num_heads):                         # static unrolled head loop
        lo, hi = h * dk, (h + 1) * dk
        qh = q_bf[:, :, lo:hi]                         # (Bb, S, dk)
        kh = k_bf[:, :, lo:hi]
        vh = v_bf[:, :, lo:hi]
        # scores: contract the dk axes directly, batched over the batch tile
        s = jnp.einsum('bqd,bkd->bqk', qh, kh,
                       preferred_element_type=jnp.float32)     # (Bb, S, S) f32
        s = s - jnp.max(s, axis=-1, keepdims=True)     # stable softmax (f32)
        p = jnp.exp(s)
        p = p * pl.reciprocal(jnp.sum(p, axis=-1, keepdims=True), approx=True)
        ctx = jnp.einsum('bqk,bkd->bqd', p.astype(jnp.bfloat16), vh,
                         preferred_element_type=jnp.float32)   # (Bb, S, dk)
        # accumulate the output projection per head: sublane-aligned row slice of wo
        attn = attn + jnp.dot(ctx.reshape(Bb * S, dk).astype(jnp.bfloat16),
                              wo[lo:hi, :], preferred_element_type=jnp.float32)

    # --- residual + LayerNorm 1 (f32) -------------------------------------------
    h1 = x + attn
    mu = jnp.mean(h1, axis=-1, keepdims=True)
    var = jnp.mean(jnp.square(h1 - mu), axis=-1, keepdims=True)
    h1 = (h1 - mu) * jax.lax.rsqrt(var + 1e-5) * g1_ref[...] + be1_ref[...]

    # --- feed-forward (bf16 matmuls, f32 accum / elementwise) -------------------
    f = jnp.dot(h1.astype(jnp.bfloat16), w1_ref[...],
                preferred_element_type=jnp.float32) + b1_ref[...]
    f = jnp.maximum(f, 0.0)
    f = jnp.dot(f.astype(jnp.bfloat16), w2_ref[...],
                preferred_element_type=jnp.float32) + b2_ref[...]

    # --- residual + LayerNorm 2 (f32) -------------------------------------------
    h2 = h1 + f
    mu2 = jnp.mean(h2, axis=-1, keepdims=True)
    var2 = jnp.mean(jnp.square(h2 - mu2), axis=-1, keepdims=True)
    out = (h2 - mu2) * jax.lax.rsqrt(var2 + 1e-5) * g2_ref[...] + be2_ref[...]

    out3 = out.reshape(Bb, S, D)
    act_ref[...] = out3                                # carry to next layer

    @pl.when(layer == pl.num_programs(1) - 1)
    def _():
        o_ref[...] = out3.astype(o_ref.dtype)          # single HBM writeback


# -----------------------------------------------------------------------------
# Wrapper: one pallas_call for the whole encoder (PE add + all layers).
# -----------------------------------------------------------------------------
def encoder_forward(src, pe_table, stacked, num_heads, *, batch_block=None):
    B, S, D = src.shape
    L = stacked["wq"].shape[0]
    d_ff = stacked["w1"].shape[-1]
    if batch_block is None:
        batch_block = B                                # whole batch resident (small demo)
    assert B % batch_block == 0

    kernel = functools.partial(encoder_kernel, num_heads=num_heads)

    def per_layer(shape):
        nz = len(shape)
        def imap(bb, l):
            return (l,) + (0,) * nz                    # leading L dim squeezed away
        return pl.BlockSpec((None,) + shape, imap)

    return pl.pallas_call(
        kernel,
        out_shape=jax.ShapeDtypeStruct((B, S, D), jnp.float32),
        grid=(B // batch_block, L),
        in_specs=[
            pl.BlockSpec((batch_block, S, D), lambda bb, l: (bb, 0, 0)),  # src tile
            pl.BlockSpec((S, D), lambda bb, l: (0, 0)),                   # pos encoding
            per_layer((D, D)), per_layer((D, D)),                         # wq, wk
            per_layer((D, D)), per_layer((D, D)),                         # wv, wo
            per_layer((D, d_ff)), per_layer((1, d_ff)),                   # w1, b1
            per_layer((d_ff, D)), per_layer((1, D)),                      # w2, b2
            per_layer((1, D)), per_layer((1, D)),                         # ln1 gamma/beta
            per_layer((1, D)), per_layer((1, D)),                         # ln2 gamma/beta
        ],
        out_specs=pl.BlockSpec((batch_block, S, D), lambda bb, l: (bb, 0, 0)),
        scratch_shapes=[pltpu.VMEM((batch_block, S, D), jnp.float32)],    # resident act
        compiler_params=pltpu.CompilerParams(
            dimension_semantics=("parallel", "arbitrary"),
            vmem_limit_bytes=48 * 1024 * 1024,
        ),
    )(
        src, pe_table[:S],
        stacked["wq"], stacked["wk"], stacked["wv"], stacked["wo"],
        stacked["w1"], stacked["b1"], stacked["w2"], stacked["b2"],
        stacked["g1"], stacked["be1"], stacked["g2"], stacked["be2"],
    )


# -----------------------------------------------------------------------------
# Parameter / PE-table construction.
# -----------------------------------------------------------------------------
def make_pe_table(max_seq_len, d_model):
    pos = jnp.arange(max_seq_len, dtype=jnp.float32)[:, None]
    i2 = jnp.arange(0, d_model, 2, dtype=jnp.float32)
    div = jnp.exp(-math.log(10000.0) * i2 / d_model)
    pe = jnp.zeros((max_seq_len, d_model), jnp.float32)
    pe = pe.at[:, 0::2].set(jnp.sin(pos * div))
    pe = pe.at[:, 1::2].set(jnp.cos(pos * div))
    return pe


def init_layer_params(key, d_model, d_ff):
    ks = jax.random.split(key, 6)
    n = lambda k, s: (jax.random.normal(k, s, jnp.float32) * 0.05)
    return {
        "wq": n(ks[0], (d_model, d_model)),
        "wk": n(ks[1], (d_model, d_model)),
        "wv": n(ks[2], (d_model, d_model)),
        "wo": n(ks[3], (d_model, d_model)),
        "w1": n(ks[4], (d_model, d_ff)),
        "b1": jnp.zeros((1, d_ff), jnp.float32),
        "w2": n(ks[5], (d_ff, d_model)),
        "b2": jnp.zeros((1, d_model), jnp.float32),
        "g1": jnp.ones((1, d_model), jnp.float32),
        "be1": jnp.zeros((1, d_model), jnp.float32),
        "g2": jnp.ones((1, d_model), jnp.float32),
        "be2": jnp.zeros((1, d_model), jnp.float32),
    }


def stack_layer_params(layer_params):
    """Stack per-layer params on a leading L axis; matmul weights in bf16."""
    stacked = {k: jnp.stack([p[k] for p in layer_params], axis=0)
               for k in layer_params[0]}
    for k in ("wq", "wk", "wv", "wo", "w1", "w2"):
        stacked[k] = stacked[k].astype(jnp.bfloat16)
    return stacked


# ---------------- pure-JAX f32 reference (sanity check) ----------------------
def ref_layer(x, p, num_heads):
    B, S, D = x.shape
    dk = D // num_heads
    q = x @ p["wq"]; k = x @ p["wk"]; v = x @ p["wv"]
    qh = q.reshape(B, S, num_heads, dk).transpose(0, 2, 1, 3)
    kh = k.reshape(B, S, num_heads, dk).transpose(0, 2, 1, 3)
    vh = v.reshape(B, S, num_heads, dk).transpose(0, 2, 1, 3)
    s = (qh @ kh.transpose(0, 1, 3, 2)) / math.sqrt(dk)
    a = jax.nn.softmax(s, axis=-1)
    o = (a @ vh).transpose(0, 2, 1, 3).reshape(B, S, D) @ p["wo"]
    def ln(y, g, b):
        mu = y.mean(-1, keepdims=True)
        var = ((y - mu) ** 2).mean(-1, keepdims=True)
        return (y - mu) / jnp.sqrt(var + 1e-5) * g + b
    h1 = ln(x + o, p["g1"], p["be1"])
    f = jnp.maximum(h1 @ p["w1"] + p["b1"], 0.0) @ p["w2"] + p["b2"]
    return ln(h1 + f, p["g2"], p["be2"])


def ref_forward(src, pe_table, layer_params, num_heads):
    x = src + pe_table[: src.shape[1]][None]
    for p in layer_params:
        x = ref_layer(x, p, num_heads)
    return x


if __name__ == "__main__":
    # Small but lane-dense shapes: batch=2, seq=16, d_model=128, heads=4,
    # d_ff=256, layers=2 (d_model/d_ff multiples of 128, seq multiple of 8).
    B, S, D, H, DFF, NLAYERS, MAXLEN = 2, 16, 128, 4, 256, 2, 32

    key = jax.random.PRNGKey(0)
    k_in, *k_layers = jax.random.split(key, 1 + NLAYERS)

    src = jax.random.normal(k_in, (B, S, D), jnp.float32)
    pe_table = make_pe_table(MAXLEN, D)
    layer_params = [init_layer_params(k, D, DFF) for k in k_layers]
    stacked = stack_layer_params(layer_params)

    out = encoder_forward(src, pe_table, stacked, H)
    out = jax.block_until_ready(out)

    ref = ref_forward(src, pe_table, layer_params, H)   # full-f32 reference
    assert out.shape == (B, S, D)
    assert bool(jnp.all(jnp.isfinite(out)))
    # tolerance loosened vs f32 reference: kernel matmuls run in bf16 (f32 accum)
    # and softmax uses the approx EUP reciprocal.
    assert bool(jnp.allclose(out, ref, rtol=3e-2, atol=3e-2)), float(
        jnp.max(jnp.abs(out - ref)))

    print("KERNEL_OK")
</pallas_src>

<mosaic_0001>
module attributes {stable_mosaic.version = 11 : i64} {
  func.func @encoder_kernel(%arg0: i32, %arg1: i32, %arg2: memref<2x16x128xf32, #tpu.memory_space<vmem>>, %arg3: memref<16x128xf32, #tpu.memory_space<vmem>>, %arg4: memref<1x128x128xbf16, #tpu.memory_space<vmem>>, %arg5: memref<1x128x128xbf16, #tpu.memory_space<vmem>>, %arg6: memref<1x128x128xbf16, #tpu.memory_space<vmem>>, %arg7: memref<1x128x128xbf16, #tpu.memory_space<vmem>>, %arg8: memref<1x128x256xbf16, #tpu.memory_space<vmem>>, %arg9: memref<1x1x256xf32, #tpu.memory_space<vmem>>, %arg10: memref<1x256x128xbf16, #tpu.memory_space<vmem>>, %arg11: memref<1x1x128xf32, #tpu.memory_space<vmem>>, %arg12: memref<1x1x128xf32, #tpu.memory_space<vmem>>, %arg13: memref<1x1x128xf32, #tpu.memory_space<vmem>>, %arg14: memref<1x1x128xf32, #tpu.memory_space<vmem>>, %arg15: memref<1x1x128xf32, #tpu.memory_space<vmem>>, %arg16: memref<2x16x128xf32, #tpu.memory_space<vmem>>, %arg17: memref<2x16x128xf32, #tpu.memory_space<vmem>>) attributes {dimension_semantics = [#tpu.dimension_semantics<parallel>, #tpu.dimension_semantics<arbitrary>], iteration_bounds = array<i64: 1, 2>, scalar_prefetch = 0 : i64, scratch_operands = 1 : i64, tpu.core_type = #tpu.core_type<tc>, window_params = [{transform_indices = @transform_0, window_bounds = array<i64: 2, 16, 128>}, {pipeline_mode = #tpu.pipeline_mode<synchronous>, transform_indices = @transform_1, window_bounds = array<i64: 16, 128>}, {transform_indices = @transform_2, window_bounds = array<i64: 1, 128, 128>}, {transform_indices = @transform_3, window_bounds = array<i64: 1, 128, 128>}, {transform_indices = @transform_4, window_bounds = array<i64: 1, 128, 128>}, {transform_indices = @transform_5, window_bounds = array<i64: 1, 128, 128>}, {transform_indices = @transform_6, window_bounds = array<i64: 1, 128, 256>}, {transform_indices = @transform_7, window_bounds = array<i64: 1, 1, 256>}, {transform_indices = @transform_8, window_bounds = array<i64: 1, 256, 128>}, {transform_indices = @transform_9, window_bounds = array<i64: 1, 1, 128>}, {transform_indices = @transform_10, window_bounds = array<i64: 1, 1, 128>}, {transform_indices = @transform_11, window_bounds = array<i64: 1, 1, 128>}, {transform_indices = @transform_12, window_bounds = array<i64: 1, 1, 128>}, {transform_indices = @transform_13, window_bounds = array<i64: 1, 1, 128>}, {transform_indices = @transform_14, window_bounds = array<i64: 2, 16, 128>}]} {
    %c0_i32 = arith.constant 0 : i32
    %0 = arith.cmpi eq, %arg1, %c0_i32 : i32
    %1 = arith.extui %0 : i1 to i32
    %c0_i32_0 = arith.constant 0 : i32
    %2 = arith.cmpi ne, %1, %c0_i32_0 : i32
    scf.if %2 {
      %c0_80 = arith.constant 0 : index
      %c0_81 = arith.constant 0 : index
      %c0_82 = arith.constant 0 : index
      %187 = vector.load %arg2[%c0_80, %c0_81, %c0_82] : memref<2x16x128xf32, #tpu.memory_space<vmem>>, vector<2x16x128xf32>
      %c0_83 = arith.constant 0 : index
      %c0_84 = arith.constant 0 : index
      %188 = vector.load %arg3[%c0_83, %c0_84] : memref<16x128xf32, #tpu.memory_space<vmem>>, vector<16x128xf32>
      %189 = vector.shape_cast %188 : vector<16x128xf32> to vector<1x16x128xf32>
      %190 = vector.broadcast %189 : vector<1x16x128xf32> to vector<2x16x128xf32>
      %191 = arith.addf %187, %190 : vector<2x16x128xf32>
      %c0_85 = arith.constant 0 : index
      %c0_86 = arith.constant 0 : index
      %c0_87 = arith.constant 0 : index
      %192 = vector.load %arg17[%c0_85, %c0_86, %c0_87] : memref<2x16x128xf32, #tpu.memory_space<vmem>>, vector<2x16x128xf32>
      tpu.vector_store %arg17[%c0_85, %c0_86, %c0_87], %191 {strides = array<i32>} : memref<2x16x128xf32, #tpu.memory_space<vmem>>, vector<2x16x128xf32>,
    } else {
    }
    %c0 = arith.constant 0 : index
    %c0_1 = arith.constant 0 : index
    %c0_2 = arith.constant 0 : index
    %3 = vector.load %arg17[%c0, %c0_1, %c0_2] : memref<2x16x128xf32, #tpu.memory_space<vmem>>, vector<2x16x128xf32>
    %4 = vector.shape_cast %3 : vector<2x16x128xf32> to vector<32x128xf32>
    %5 = arith.truncf %4 : vector<32x128xf32> to vector<32x128xbf16>
    %c0_3 = arith.constant 0 : index
    %c0_4 = arith.constant 0 : index
    %c0_5 = arith.constant 0 : index
    %6 = vector.load %arg4[%c0_3, %c0_4, %c0_5] : memref<1x128x128xbf16, #tpu.memory_space<vmem>>, vector<1x128x128xbf16>
    %7 = vector.shape_cast %6 : vector<1x128x128xbf16> to vector<128x128xbf16>
    %cst = arith.constant dense<0.000000e+00> : vector<32x128xf32>
    %8 = tpu.matmul %5, %7, %cst {dimension_numbers = #tpu.dot_dimension_numbers<[1], [0], [0], [1], [0, 0, 1, 1], [], []>} : vector<32x128xbf16>, vector<128x128xbf16>, vector<32x128xf32> -> vector<32x128xf32>
    %cst_6 = arith.constant 0.176776692 : f32
    %9 = vector.broadcast %cst_6 : f32 to vector<32x128xf32>
    %10 = arith.mulf %8, %9 : vector<32x128xf32>
    %c0_7 = arith.constant 0 : index
    %c0_8 = arith.constant 0 : index
    %c0_9 = arith.constant 0 : index
    %11 = vector.load %arg5[%c0_7, %c0_8, %c0_9] : memref<1x128x128xbf16, #tpu.memory_space<vmem>>, vector<1x128x128xbf16>
    %12 = vector.shape_cast %11 : vector<1x128x128xbf16> to vector<128x128xbf16>
    %cst_10 = arith.constant dense<0.000000e+00> : vector<32x128xf32>
    %13 = tpu.matmul %5, %12, %cst_10 {dimension_numbers = #tpu.dot_dimension_numbers<[1], [0], [0], [1], [0, 0, 1, 1], [], []>} : vector<32x128xbf16>, vector<128x128xbf16>, vector<32x128xf32> -> vector<32x128xf32>
    %c0_11 = arith.constant 0 : index
    %c0_12 = arith.constant 0 : index
    %c0_13 = arith.constant 0 : index
    %14 = vector.load %arg6[%c0_11, %c0_12, %c0_13] : memref<1x128x128xbf16, #tpu.memory_space<vmem>>, vector<1x128x128xbf16>
    %15 = vector.shape_cast %14 : vector<1x128x128xbf16> to vector<128x128xbf16>
    %cst_14 = arith.constant dense<0.000000e+00> : vector<32x128xf32>
    %16 = tpu.matmul %5, %15, %cst_14 {dimension_numbers = #tpu.dot_dimension_numbers<[1], [0], [0], [1], [0, 0, 1, 1], [], []>} : vector<32x128xbf16>, vector<128x128xbf16>, vector<32x128xf32> -> vector<32x128xf32>
    %17 = arith.truncf %10 : vector<32x128xf32> to vector<32x128xbf16>
    %18 = vector.shape_cast %17 : vector<32x128xbf16> to vector<2x16x128xbf16>
    %19 = arith.truncf %13 : vector<32x128xf32> to vector<32x128xbf16>
    %20 = vector.shape_cast %19 : vector<32x128xbf16> to vector<2x16x128xbf16>
    %21 = arith.truncf %16 : vector<32x128xf32> to vector<32x128xbf16>
    %22 = vector.shape_cast %21 : vector<32x128xbf16> to vector<2x16x128xbf16>
    %c0_15 = arith.constant 0 : index
    %c0_16 = arith.constant 0 : index
    %c0_17 = arith.constant 0 : index
    %23 = vector.load %arg7[%c0_15, %c0_16, %c0_17] : memref<1x128x128xbf16, #tpu.memory_space<vmem>>, vector<1x128x128xbf16>
    %24 = vector.shape_cast %23 : vector<1x128x128xbf16> to vector<128x128xbf16>
    %cst_18 = arith.constant 0.000000e+00 : f32
    %25 = vector.broadcast %cst_18 : f32 to vector<32x128xf32>
    %26 = vector.extract_strided_slice %18 {offsets = [0, 0, 0], sizes = [2, 16, 32], strides = [1, 1, 1]} : vector<2x16x128xbf16> to vector<2x16x32xbf16>
    %27 = vector.extract_strided_slice %20 {offsets = [0, 0, 0], sizes = [2, 16, 32], strides = [1, 1, 1]} : vector<2x16x128xbf16> to vector<2x16x32xbf16>
    %28 = vector.extract_strided_slice %22 {offsets = [0, 0, 0], sizes = [2, 16, 32], strides = [1, 1, 1]} : vector<2x16x128xbf16> to vector<2x16x32xbf16>
    "tpu.trace_start"() <{level = 10 : i32, message = "bqd,bkd->bqk"}> : () -> ()
    %cst_19 = arith.constant dense<0.000000e+00> : vector<2x16x16xf32>
    %29 = tpu.matmul %26, %27, %cst_19 {dimension_numbers = #tpu.dot_dimension_numbers<[2], [2], [1], [1], [0, 0, 0, 1, 1, 1], [0], [0]>} : vector<2x16x32xbf16>, vector<2x16x32xbf16>, vector<2x16x16xf32> -> vector<2x16x16xf32>
    "tpu.trace_stop"() : () -> ()
    %cst_20 = arith.constant dense<0xFF800000> : vector<2x16xf32>
    %30 = vector.multi_reduction <maximumf>, %29, %cst_20 [2] : vector<2x16x16xf32> to vector<2x16xf32>
    %31 = vector.shape_cast %30 : vector<2x16xf32> to vector<2x16x1xf32>
    %32 = vector.broadcast %31 : vector<2x16x1xf32> to vector<2x16x16xf32>
    %33 = arith.subf %29, %32 : vector<2x16x16xf32>
    %34 = math.exp %33 : vector<2x16x16xf32>
    %cst_21 = arith.constant dense<0.000000e+00> : vector<2x16xf32>
    %35 = vector.multi_reduction <add>, %34, %cst_21 [2] : vector<2x16x16xf32> to vector<2x16xf32>
    %36 = vector.shape_cast %35 : vector<2x16xf32> to vector<2x16x1xf32>
    %37 = tpu.reciprocal %36 {approx = true} : vector<2x16x1xf32> -> vector<2x16x1xf32>
    %38 = vector.broadcast %37 : vector<2x16x1xf32> to vector<2x16x16xf32>
    %39 = arith.mulf %34, %38 : vector<2x16x16xf32>
    %40 = arith.truncf %39 : vector<2x16x16xf32> to vector<2x16x16xbf16>
    "tpu.trace_start"() <{level = 10 : i32, message = "bqk,bkd->bqd"}> : () -> ()
    %cst_22 = arith.constant dense<0.000000e+00> : vector<2x16x32xf32>
    %41 = tpu.matmul %40, %28, %cst_22 {dimension_numbers = #tpu.dot_dimension_numbers<[2], [1], [1], [2], [0, 0, 0, 1, 1, 2], [0], [0]>} : vector<2x16x16xbf16>, vector<2x16x32xbf16>, vector<2x16x32xf32> -> vector<2x16x32xf32>
    "tpu.trace_stop"() : () -> ()
    %42 = vector.shape_cast %41 : vector<2x16x32xf32> to vector<32x32xf32>
    %43 = arith.truncf %42 : vector<32x32xf32> to vector<32x32xbf16>
    %44 = vector.extract_strided_slice %24 {offsets = [0, 0], sizes = [32, 128], strides = [1, 1]} : vector<128x128xbf16> to vector<32x128xbf16>
    %cst_23 = arith.constant dense<0.000000e+00> : vector<32x128xf32>
    %45 = tpu.matmul %43, %44, %cst_23 {dimension_numbers = #tpu.dot_dimension_numbers<[1], [0], [0], [1], [0, 0, 1, 1], [], []>} : vector<32x32xbf16>, vector<32x128xbf16>, vector<32x128xf32> -> vector<32x128xf32>
    %46 = arith.addf %25, %45 : vector<32x128xf32>
    %47 = vector.extract_strided_slice %18 {offsets = [0, 0, 32], sizes = [2, 16, 32], strides = [1, 1, 1]} : vector<2x16x128xbf16> to vector<2x16x32xbf16>
    %48 = vector.extract_strided_slice %20 {offsets = [0, 0, 32], sizes = [2, 16, 32], strides = [1, 1, 1]} : vector<2x16x128xbf16> to vector<2x16x32xbf16>
    %49 = vector.extract_strided_slice %22 {offsets = [0, 0, 32], sizes = [2, 16, 32], strides = [1, 1, 1]} : vector<2x16x128xbf16> to vector<2x16x32xbf16>
    "tpu.trace_start"() <{level = 10 : i32, message = "bqd,bkd->bqk"}> : () -> ()
    %cst_24 = arith.constant dense<0.000000e+00> : vector<2x16x16xf32>
    %50 = tpu.matmul %47, %48, %cst_24 {dimension_numbers = #tpu.dot_dimension_numbers<[2], [2], [1], [1], [0, 0, 0, 1, 1, 1], [0], [0]>} : vector<2x16x32xbf16>, vector<2x16x32xbf16>, vector<2x16x16xf32> -> vector<2x16x16xf32>
    "tpu.trace_stop"() : () -> ()
    %cst_25 = arith.constant dense<0xFF800000> : vector<2x16xf32>
    %51 = vector.multi_reduction <maximumf>, %50, %cst_25 [2] : vector<2x16x16xf32> to vector<2x16xf32>
    %52 = vector.shape_cast %51 : vector<2x16xf32> to vector<2x16x1xf32>
    %53 = vector.broadcast %52 : vector<2x16x1xf32> to vector<2x16x16xf32>
    %54 = arith.subf %50, %53 : vector<2x16x16xf32>
    %55 = math.exp %54 : vector<2x16x16xf32>
    %cst_26 = arith.constant dense<0.000000e+00> : vector<2x16xf32>
    %56 = vector.multi_reduction <add>, %55, %cst_26 [2] : vector<2x16x16xf32> to vector<2x16xf32>
    %57 = vector.shape_cast %56 : vector<2x16xf32> to vector<2x16x1xf32>
    %58 = tpu.reciprocal %57 {approx = true} : vector<2x16x1xf32> -> vector<2x16x1xf32>
    %59 = vector.broadcast %58 : vector<2x16x1xf32> to vector<2x16x16xf32>
    %60 = arith.mulf %55, %59 : vector<2x16x16xf32>
    %61 = arith.truncf %60 : vector<2x16x16xf32> to vector<2x16x16xbf16>
    "tpu.trace_start"() <{level = 10 : i32, message = "bqk,bkd->bqd"}> : () -> ()
    %cst_27 = arith.constant dense<0.000000e+00> : vector<2x16x32xf32>
    %62 = tpu.matmul %61, %49, %cst_27 {dimension_numbers = #tpu.dot_dimension_numbers<[2], [1], [1], [2], [0, 0, 0, 1, 1, 2], [0], [0]>} : vector<2x16x16xbf16>, vector<2x16x32xbf16>, vector<2x16x32xf32> -> vector<2x16x32xf32>
    "tpu.trace_stop"() : () -> ()
    %63 = vector.shape_cast %62 : vector<2x16x32xf32> to vector<32x32xf32>
    %64 = arith.truncf %63 : vector<32x32xf32> to vector<32x32xbf16>
    %65 = vector.extract_strided_slice %24 {offsets = [32, 0], sizes = [32, 128], strides = [1, 1]} : vector<128x128xbf16> to vector<32x128xbf16>
    %cst_28 = arith.constant dense<0.000000e+00> : vector<32x128xf32>
    %66 = tpu.matmul %64, %65, %cst_28 {dimension_numbers = #tpu.dot_dimension_numbers<[1], [0], [0], [1], [0, 0, 1, 1], [], []>} : vector<32x32xbf16>, vector<32x128xbf16>, vector<32x128xf32> -> vector<32x128xf32>
    %67 = arith.addf %46, %66 : vector<32x128xf32>
    %68 = vector.extract_strided_slice %18 {offsets = [0, 0, 64], sizes = [2, 16, 32], strides = [1, 1, 1]} : vector<2x16x128xbf16> to vector<2x16x32xbf16>
    %69 = vector.extract_strided_slice %20 {offsets = [0, 0, 64], sizes = [2, 16, 32], strides = [1, 1, 1]} : vector<2x16x128xbf16> to vector<2x16x32xbf16>
    %70 = vector.extract_strided_slice %22 {offsets = [0, 0, 64], sizes = [2, 16, 32], strides = [1, 1, 1]} : vector<2x16x128xbf16> to vector<2x16x32xbf16>
    "tpu.trace_start"() <{level = 10 : i32, message = "bqd,bkd->bqk"}> : () -> ()
    %cst_29 = arith.constant dense<0.000000e+00> : vector<2x16x16xf32>
    %71 = tpu.matmul %68, %69, %cst_29 {dimension_numbers = #tpu.dot_dimension_numbers<[2], [2], [1], [1], [0, 0, 0, 1, 1, 1], [0], [0]>} : vector<2x16x32xbf16>, vector<2x16x32xbf16>, vector<2x16x16xf32> -> vector<2x16x16xf32>
    "tpu.trace_stop"() : () -> ()
    %cst_30 = arith.constant dense<0xFF800000> : vector<2x16xf32>
    %72 = vector.multi_reduction <maximumf>, %71, %cst_30 [2] : vector<2x16x16xf32> to vector<2x16xf32>
    %73 = vector.shape_cast %72 : vector<2x16xf32> to vector<2x16x1xf32>
    %74 = vector.broadcast %73 : vector<2x16x1xf32> to vector<2x16x16xf32>
    %75 = arith.subf %71, %74 : vector<2x16x16xf32>
    %76 = math.exp %75 : vector<2x16x16xf32>
    %cst_31 = arith.constant dense<0.000000e+00> : vector<2x16xf32>
    %77 = vector.multi_reduction <add>, %76, %cst_31 [2] : vector<2x16x16xf32> to vector<2x16xf32>
    %78 = vector.shape_cast %77 : vector<2x16xf32> to vector<2x16x1xf32>
    %79 = tpu.reciprocal %78 {approx = true} : vector<2x16x1xf32> -> vector<2x16x1xf32>
    %80 = vector.broadcast %79 : vector<2x16x1xf32> to vector<2x16x16xf32>
    %81 = arith.mulf %76, %80 : vector<2x16x16xf32>
    %82 = arith.truncf %81 : vector<2x16x16xf32> to vector<2x16x16xbf16>
    "tpu.trace_start"() <{level = 10 : i32, message = "bqk,bkd->bqd"}> : () -> ()
    %cst_32 = arith.constant dense<0.000000e+00> : vector<2x16x32xf32>
    %83 = tpu.matmul %82, %70, %cst_32 {dimension_numbers = #tpu.dot_dimension_numbers<[2], [1], [1], [2], [0, 0, 0, 1, 1, 2], [0], [0]>} : vector<2x16x16xbf16>, vector<2x16x32xbf16>, vector<2x16x32xf32> -> vector<2x16x32xf32>
    "tpu.trace_stop"() : () -> ()
    %84 = vector.shape_cast %83 : vector<2x16x32xf32> to vector<32x32xf32>
    %85 = arith.truncf %84 : vector<32x32xf32> to vector<32x32xbf16>
    %86 = vector.extract_strided_slice %24 {offsets = [64, 0], sizes = [32, 128], strides = [1, 1]} : vector<128x128xbf16> to vector<32x128xbf16>
    %cst_33 = arith.constant dense<0.000000e+00> : vector<32x128xf32>
    %87 = tpu.matmul %85, %86, %cst_33 {dimension_numbers = #tpu.dot_dimension_numbers<[1], [0], [0], [1], [0, 0, 1, 1], [], []>} : vector<32x32xbf16>, vector<32x128xbf16>, vector<32x128xf32> -> vector<32x128xf32>
    %88 = arith.addf %67, %87 : vector<32x128xf32>
    %89 = vector.extract_strided_slice %18 {offsets = [0, 0, 96], sizes = [2, 16, 32], strides = [1, 1, 1]} : vector<2x16x128xbf16> to vector<2x16x32xbf16>
    %90 = vector.extract_strided_slice %20 {offsets = [0, 0, 96], sizes = [2, 16, 32], strides = [1, 1, 1]} : vector<2x16x128xbf16> to vector<2x16x32xbf16>
    %91 = vector.extract_strided_slice %22 {offsets = [0, 0, 96], sizes = [2, 16, 32], strides = [1, 1, 1]} : vector<2x16x128xbf16> to vector<2x16x32xbf16>
    "tpu.trace_start"() <{level = 10 : i32, message = "bqd,bkd->bqk"}> : () -> ()
    %cst_34 = arith.constant dense<0.000000e+00> : vector<2x16x16xf32>
    %92 = tpu.matmul %89, %90, %cst_34 {dimension_numbers = #tpu.dot_dimension_numbers<[2], [2], [1], [1], [0, 0, 0, 1, 1, 1], [0], [0]>} : vector<2x16x32xbf16>, vector<2x16x32xbf16>, vector<2x16x16xf32> -> vector<2x16x16xf32>
    "tpu.trace_stop"() : () -> ()
    %cst_35 = arith.constant dense<0xFF800000> : vector<2x16xf32>
    %93 = vector.multi_reduction <maximumf>, %92, %cst_35 [2] : vector<2x16x16xf32> to vector<2x16xf32>
    %94 = vector.shape_cast %93 : vector<2x16xf32> to vector<2x16x1xf32>
    %95 = vector.broadcast %94 : vector<2x16x1xf32> to vector<2x16x16xf32>
    %96 = arith.subf %92, %95 : vector<2x16x16xf32>
    %97 = math.exp %96 : vector<2x16x16xf32>
    %cst_36 = arith.constant dense<0.000000e+00> : vector<2x16xf32>
    %98 = vector.multi_reduction <add>, %97, %cst_36 [2] : vector<2x16x16xf32> to vector<2x16xf32>
    %99 = vector.shape_cast %98 : vector<2x16xf32> to vector<2x16x1xf32>
    %100 = tpu.reciprocal %99 {approx = true} : vector<2x16x1xf32> -> vector<2x16x1xf32>
    %101 = vector.broadcast %100 : vector<2x16x1xf32> to vector<2x16x16xf32>
    %102 = arith.mulf %97, %101 : vector<2x16x16xf32>
    %103 = arith.truncf %102 : vector<2x16x16xf32> to vector<2x16x16xbf16>
    "tpu.trace_start"() <{level = 10 : i32, message = "bqk,bkd->bqd"}> : () -> ()
    %cst_37 = arith.constant dense<0.000000e+00> : vector<2x16x32xf32>
    %104 = tpu.matmul %103, %91, %cst_37 {dimension_numbers = #tpu.dot_dimension_numbers<[2], [1], [1], [2], [0, 0, 0, 1, 1, 2], [0], [0]>} : vector<2x16x16xbf16>, vector<2x16x32xbf16>, vector<2x16x32xf32> -> vector<2x16x32xf32>
    "tpu.trace_stop"() : () -> ()
    %105 = vector.shape_cast %104 : vector<2x16x32xf32> to vector<32x32xf32>
    %106 = arith.truncf %105 : vector<32x32xf32> to vector<32x32xbf16>
    %107 = vector.extract_strided_slice %24 {offsets = [96, 0], sizes = [32, 128], strides = [1, 1]} : vector<128x128xbf16> to vector<32x128xbf16>
    %cst_38 = arith.constant dense<0.000000e+00> : vector<32x128xf32>
    %108 = tpu.matmul %106, %107, %cst_38 {dimension_numbers = #tpu.dot_dimension_numbers<[1], [0], [0], [1], [0, 0, 1, 1], [], []>} : vector<32x32xbf16>, vector<32x128xbf16>, vector<32x128xf32> -> vector<32x128xf32>
    %109 = arith.addf %88, %108 : vector<32x128xf32>
    %110 = arith.addf %4, %109 : vector<32x128xf32>
    %cst_39 = arith.constant dense<0.000000e+00> : vector<32xf32>
    %111 = vector.multi_reduction <add>, %110, %cst_39 [1] : vector<32x128xf32> to vector<32xf32>
    %112 = vector.shape_cast %111 : vector<32xf32> to vector<32x1xf32>
    %cst_40 = arith.constant 1.280000e+02 : f32
    %113 = vector.broadcast %cst_40 : f32 to vector<32x1xf32>
    %114 = arith.divf %112, %113 : vector<32x1xf32>
    %115 = vector.broadcast %114 : vector<32x1xf32> to vector<32x128xf32>
    %116 = arith.subf %110, %115 : vector<32x128xf32>
    %117 = arith.mulf %116, %116 : vector<32x128xf32>
    %cst_41 = arith.constant dense<0.000000e+00> : vector<32xf32>
    %118 = vector.multi_reduction <add>, %117, %cst_41 [1] : vector<32x128xf32> to vector<32xf32>
    %119 = vector.shape_cast %118 : vector<32xf32> to vector<32x1xf32>
    %cst_42 = arith.constant 1.280000e+02 : f32
    %120 = vector.broadcast %cst_42 : f32 to vector<32x1xf32>
    %121 = arith.divf %119, %120 : vector<32x1xf32>
    %122 = vector.broadcast %114 : vector<32x1xf32> to vector<32x128xf32>
    %123 = arith.subf %110, %122 : vector<32x128xf32>
    %cst_43 = arith.constant 9.99999974E-6 : f32
    %124 = vector.broadcast %cst_43 : f32 to vector<32x1xf32>
    %125 = arith.addf %121, %124 : vector<32x1xf32>
    %126 = math.rsqrt %125 : vector<32x1xf32>
    %127 = vector.broadcast %126 : vector<32x1xf32> to vector<32x128xf32>
    %128 = arith.mulf %123, %127 : vector<32x128xf32>
    %c0_44 = arith.constant 0 : index
    %c0_45 = arith.constant 0 : index
    %c0_46 = arith.constant 0 : index
    %129 = vector.load %arg12[%c0_44, %c0_45, %c0_46] : memref<1x1x128xf32, #tpu.memory_space<vmem>>, vector<1x1x128xf32>
    %130 = vector.shape_cast %129 : vector<1x1x128xf32> to vector<1x128xf32>
    %131 = vector.broadcast %130 : vector<1x128xf32> to vector<32x128xf32>
    %132 = arith.mulf %128, %131 : vector<32x128xf32>
    %c0_47 = arith.constant 0 : index
    %c0_48 = arith.constant 0 : index
    %c0_49 = arith.constant 0 : index
    %133 = vector.load %arg13[%c0_47, %c0_48, %c0_49] : memref<1x1x128xf32, #tpu.memory_space<vmem>>, vector<1x1x128xf32>
    %134 = vector.shape_cast %133 : vector<1x1x128xf32> to vector<1x128xf32>
    %135 = vector.broadcast %134 : vector<1x128xf32> to vector<32x128xf32>
    %136 = arith.addf %132, %135 : vector<32x128xf32>
    %137 = arith.truncf %136 : vector<32x128xf32> to vector<32x128xbf16>
    %c0_50 = arith.constant 0 : index
    %c0_51 = arith.constant 0 : index
    %c0_52 = arith.constant 0 : index
    %138 = vector.load %arg8[%c0_50, %c0_51, %c0_52] : memref<1x128x256xbf16, #tpu.memory_space<vmem>>, vector<1x128x256xbf16>
    %139 = vector.shape_cast %138 : vector<1x128x256xbf16> to vector<128x256xbf16>
    %cst_53 = arith.constant dense<0.000000e+00> : vector<32x256xf32>
    %140 = tpu.matmul %137, %139, %cst_53 {dimension_numbers = #tpu.dot_dimension_numbers<[1], [0], [0], [1], [0, 0, 1, 1], [], []>} : vector<32x128xbf16>, vector<128x256xbf16>, vector<32x256xf32> -> vector<32x256xf32>
    %c0_54 = arith.constant 0 : index
    %c0_55 = arith.constant 0 : index
    %c0_56 = arith.constant 0 : index
    %141 = vector.load %arg9[%c0_54, %c0_55, %c0_56] : memref<1x1x256xf32, #tpu.memory_space<vmem>>, vector<1x1x256xf32>
    %142 = vector.shape_cast %141 : vector<1x1x256xf32> to vector<1x256xf32>
    %143 = vector.broadcast %142 : vector<1x256xf32> to vector<32x256xf32>
    %144 = arith.addf %140, %143 : vector<32x256xf32>
    %cst_57 = arith.constant 0.000000e+00 : f32
    %145 = vector.broadcast %cst_57 : f32 to vector<32x256xf32>
    %146 = arith.maximumf %144, %145 : vector<32x256xf32>
    %147 = arith.truncf %146 : vector<32x256xf32> to vector<32x256xbf16>
    %c0_58 = arith.constant 0 : index
    %c0_59 = arith.constant 0 : index
    %c0_60 = arith.constant 0 : index
    %148 = vector.load %arg10[%c0_58, %c0_59, %c0_60] : memref<1x256x128xbf16, #tpu.memory_space<vmem>>, vector<1x256x128xbf16>
    %149 = vector.shape_cast %148 : vector<1x256x128xbf16> to vector<256x128xbf16>
    %cst_61 = arith.constant dense<0.000000e+00> : vector<32x128xf32>
    %150 = tpu.matmul %147, %149, %cst_61 {dimension_numbers = #tpu.dot_dimension_numbers<[1], [0], [0], [1], [0, 0, 1, 1], [], []>} : vector<32x256xbf16>, vector<256x128xbf16>, vector<32x128xf32> -> vector<32x128xf32>
    %c0_62 = arith.constant 0 : index
    %c0_63 = arith.constant 0 : index
    %c0_64 = arith.constant 0 : index
    %151 = vector.load %arg11[%c0_62, %c0_63, %c0_64] : memref<1x1x128xf32, #tpu.memory_space<vmem>>, vector<1x1x128xf32>
    %152 = vector.shape_cast %151 : vector<1x1x128xf32> to vector<1x128xf32>
    %153 = vector.broadcast %152 : vector<1x128xf32> to vector<32x128xf32>
    %154 = arith.addf %150, %153 : vector<32x128xf32>
    %155 = arith.addf %136, %154 : vector<32x128xf32>
    %cst_65 = arith.constant dense<0.000000e+00> : vector<32xf32>
    %156 = vector.multi_reduction <add>, %155, %cst_65 [1] : vector<32x128xf32> to vector<32xf32>
    %157 = vector.shape_cast %156 : vector<32xf32> to vector<32x1xf32>
    %cst_66 = arith.constant 1.280000e+02 : f32
    %158 = vector.broadcast %cst_66 : f32 to vector<32x1xf32>
    %159 = arith.divf %157, %158 : vector<32x1xf32>
    %160 = vector.broadcast %159 : vector<32x1xf32> to vector<32x128xf32>
    %161 = arith.subf %155, %160 : vector<32x128xf32>
    %162 = arith.mulf %161, %161 : vector<32x128xf32>
    %cst_67 = arith.constant dense<0.000000e+00> : vector<32xf32>
    %163 = vector.multi_reduction <add>, %162, %cst_67 [1] : vector<32x128xf32> to vector<32xf32>
    %164 = vector.shape_cast %163 : vector<32xf32> to vector<32x1xf32>
    %cst_68 = arith.constant 1.280000e+02 : f32
    %165 = vector.broadcast %cst_68 : f32 to vector<32x1xf32>
    %166 = arith.divf %164, %165 : vector<32x1xf32>
    %167 = vector.broadcast %159 : vector<32x1xf32> to vector<32x128xf32>
    %168 = arith.subf %155, %167 : vector<32x128xf32>
    %cst_69 = arith.constant 9.99999974E-6 : f32
    %169 = vector.broadcast %cst_69 : f32 to vector<32x1xf32>
    %170 = arith.addf %166, %169 : vector<32x1xf32>
    %171 = math.rsqrt %170 : vector<32x1xf32>
    %172 = vector.broadcast %171 : vector<32x1xf32> to vector<32x128xf32>
    %173 = arith.mulf %168, %172 : vector<32x128xf32>
    %c0_70 = arith.constant 0 : index
    %c0_71 = arith.constant 0 : index
    %c0_72 = arith.constant 0 : index
    %174 = vector.load %arg14[%c0_70, %c0_71, %c0_72] : memref<1x1x128xf32, #tpu.memory_space<vmem>>, vector<1x1x128xf32>
    %175 = vector.shape_cast %174 : vector<1x1x128xf32> to vector<1x128xf32>
    %176 = vector.broadcast %175 : vector<1x128xf32> to vector<32x128xf32>
    %177 = arith.mulf %173, %176 : vector<32x128xf32>
    %c0_73 = arith.constant 0 : index
    %c0_74 = arith.constant 0 : index
    %c0_75 = arith.constant 0 : index
    %178 = vector.load %arg15[%c0_73, %c0_74, %c0_75] : memref<1x1x128xf32, #tpu.memory_space<vmem>>, vector<1x1x128xf32>
    %179 = vector.shape_cast %178 : vector<1x1x128xf32> to vector<1x128xf32>
    %180 = vector.broadcast %179 : vector<1x128xf32> to vector<32x128xf32>
    %181 = arith.addf %177, %180 : vector<32x128xf32>
    %182 = vector.shape_cast %181 : vector<32x128xf32> to vector<2x16x128xf32>
    %c0_76 = arith.constant 0 : index
    %c0_77 = arith.constant 0 : index
    %c0_78 = arith.constant 0 : index
    %183 = vector.load %arg17[%c0_76, %c0_77, %c0_78] : memref<2x16x128xf32, #tpu.memory_space<vmem>>, vector<2x16x128xf32>
    tpu.vector_store %arg17[%c0_76, %c0_77, %c0_78], %182 {strides = array<i32>} : memref<2x16x128xf32, #tpu.memory_space<vmem>>, vector<2x16x128xf32>,
    %c1_i32 = arith.constant 1 : i32
    %184 = arith.cmpi eq, %arg1, %c1_i32 : i32
    %185 = arith.extui %184 : i1 to i32
    %c0_i32_79 = arith.constant 0 : i32
    %186 = arith.cmpi ne, %185, %c0_i32_79 : i32
    scf.if %186 {
      %c0_80 = arith.constant 0 : index
      %c0_81 = arith.constant 0 : index
      %c0_82 = arith.constant 0 : index
      %187 = vector.load %arg16[%c0_80, %c0_81, %c0_82] : memref<2x16x128xf32, #tpu.memory_space<vmem>>, vector<2x16x128xf32>
      tpu.vector_store %arg16[%c0_80, %c0_81, %c0_82], %182 {strides = array<i32>} : memref<2x16x128xf32, #tpu.memory_space<vmem>>, vector<2x16x128xf32>,
    } else {
    }
    return
  }
  func.func @transform_0(%arg0: i32, %arg1: i32) -> (i32, i32, i32) {
    %c0_i32 = arith.constant 0 : i32
    %c0_i32_0 = arith.constant 0 : i32
    %c0_i32_1 = arith.constant 0 : i32
    return %arg0, %c0_i32, %c0_i32_0 : i32, i32, i32
  }
  func.func @transform_1(%arg0: i32, %arg1: i32) -> (i32, i32) {
    %c0_i32 = arith.constant 0 : i32
    %c0_i32_0 = arith.constant 0 : i32
    %c0_i32_1 = arith.constant 0 : i32
    return %c0_i32, %c0_i32_0 : i32, i32
  }
  func.func @transform_2(%arg0: i32, %arg1: i32) -> (i32, i32, i32) {
    %c0_i32 = arith.constant 0 : i32
    %c0_i32_0 = arith.constant 0 : i32
    %c0_i32_1 = arith.constant 0 : i32
    return %arg1, %c0_i32, %c0_i32_0 : i32, i32, i32
  }
  func.func @transform_3(%arg0: i32, %arg1: i32) -> (i32, i32, i32) {
    %c0_i32 = arith.constant 0 : i32
    %c0_i32_0 = arith.constant 0 : i32
    %c0_i32_1 = arith.constant 0 : i32
    return %arg1, %c0_i32, %c0_i32_0 : i32, i32, i32
  }
  func.func @transform_4(%arg0: i32, %arg1: i32) -> (i32, i32, i32) {
    %c0_i32 = arith.constant 0 : i32
    %c0_i32_0 = arith.constant 0 : i32
    %c0_i32_1 = arith.constant 0 : i32
    return %arg1, %c0_i32, %c0_i32_0 : i32, i32, i32
  }
  func.func @transform_5(%arg0: i32, %arg1: i32) -> (i32, i32, i32) {
    %c0_i32 = arith.constant 0 : i32
    %c0_i32_0 = arith.constant 0 : i32
    %c0_i32_1 = arith.constant 0 : i32
    return %arg1, %c0_i32, %c0_i32_0 : i32, i32, i32
  }
  func.func @transform_6(%arg0: i32, %arg1: i32) -> (i32, i32, i32) {
    %c0_i32 = arith.constant 0 : i32
    %c0_i32_0 = arith.constant 0 : i32
    %c0_i32_1 = arith.constant 0 : i32
    return %arg1, %c0_i32, %c0_i32_0 : i32, i32, i32
  }
  func.func @transform_7(%arg0: i32, %arg1: i32) -> (i32, i32, i32) {
    %c0_i32 = arith.constant 0 : i32
    %c0_i32_0 = arith.constant 0 : i32
    %c0_i32_1 = arith.constant 0 : i32
    return %arg1, %c0_i32, %c0_i32_0 : i32, i32, i32
  }
  func.func @transform_8(%arg0: i32, %arg1: i32) -> (i32, i32, i32) {
    %c0_i32 = arith.constant 0 : i32
    %c0_i32_0 = arith.constant 0 : i32
    %c0_i32_1 = arith.constant 0 : i32
    return %arg1, %c0_i32, %c0_i32_0 : i32, i32, i32
  }
  func.func @transform_9(%arg0: i32, %arg1: i32) -> (i32, i32, i32) {
    %c0_i32 = arith.constant 0 : i32
    %c0_i32_0 = arith.constant 0 : i32
    %c0_i32_1 = arith.constant 0 : i32
    return %arg1, %c0_i32, %c0_i32_0 : i32, i32, i32
  }
  func.func @transform_10(%arg0: i32, %arg1: i32) -> (i32, i32, i32) {
    %c0_i32 = arith.constant 0 : i32
    %c0_i32_0 = arith.constant 0 : i32
    %c0_i32_1 = arith.constant 0 : i32
    return %arg1, %c0_i32, %c0_i32_0 : i32, i32, i32
  }
  func.func @transform_11(%arg0: i32, %arg1: i32) -> (i32, i32, i32) {
    %c0_i32 = arith.constant 0 : i32
    %c0_i32_0 = arith.constant 0 : i32
    %c0_i32_1 = arith.constant 0 : i32
    return %arg1, %c0_i32, %c0_i32_0 : i32, i32, i32
  }
  func.func @transform_12(%arg0: i32, %arg1: i32) -> (i32, i32, i32) {
    %c0_i32 = arith.constant 0 : i32
    %c0_i32_0 = arith.constant 0 : i32
    %c0_i32_1 = arith.constant 0 : i32
    return %arg1, %c0_i32, %c0_i32_0 : i32, i32, i32
  }
  func.func @transform_13(%arg0: i32, %arg1: i32) -> (i32, i32, i32) {
    %c0_i32 = arith.constant 0 : i32
    %c0_i32_0 = arith.constant 0 : i32
    %c0_i32_1 = arith.constant 0 : i32
    return %arg1, %c0_i32, %c0_i32_0 : i32, i32, i32
  }
  func.func @transform_14(%arg0: i32, %arg1: i32) -> (i32, i32, i32) {
    %c0_i32 = arith.constant 0 : i32
    %c0_i32_0 = arith.constant 0 : i32
    %c0_i32_1 = arith.constant 0 : i32
    return %arg0, %c0_i32, %c0_i32_0 : i32, i32, i32
  }
}

</mosaic_0001>

<bundles_post_ra>
// kernel: tpu_custom_call.1
= control target key start
LH: loop header
LB: loop body
LE: loop exit
PB: predicated region body
PF: predicated region fallthrough
CT: control target
= control target key end

     0   :  { %s4948_s0 = inlined_call_operand.hbm [shape: f32[2,16,128], index: 0, kind: input, shape index: {}]   ;;  %s4949_s1 = inlined_call_operand.hbm [shape: f32[16,128], index: 1, kind: input, shape index: {}]   ;;  %s4950_s2 = inlined_call_operand.hbm [shape: bf16[2,128,128], index: 2, kind: input, shape index: {}]   ;;  %s4951_s3 = inlined_call_operand.hbm [shape: bf16[2,128,128], index: 3, kind: input, shape index: {}]   ;;  %s4952_s4 = inlined_call_operand.hbm [shape: bf16[2,128,128], index: 4, kind: input, shape index: {}]   ;;  %s4953_s5 = inlined_call_operand.hbm [shape: bf16[2,128,128], index: 5, kind: input, shape index: {}]   ;;  %s4954_s6 = inlined_call_operand.hbm [shape: bf16[2,128,256], index: 6, kind: input, shape index: {}]   ;;  %s4955_s7 = inlined_call_operand.vmem [shape: f32[2,1,256], index: 7, kind: input, shape index: {}]   ;;  %s4956_s8 = inlined_call_operand.hbm [shape: bf16[2,256,128], index: 8, kind: input, shape index: {}]   ;;  %s4957_s9 = inlined_call_operand.vmem [shape: f32[2,1,128], index: 9, kind: input, shape index: {}]   ;;  %s4958_s10 = inlined_call_operand.vmem [shape: f32[2,1,128], index: 10, kind: input, shape index: {}]   ;;  %s4959_s11 = inlined_call_operand.vmem [shape: f32[2,1,128], index: 11, kind: input, shape index: {}]   ;;  %s4960_s12 = inlined_call_operand.vmem [shape: f32[2,1,128], index: 12, kind: input, shape index: {}]   ;;  %s4961_s13 = inlined_call_operand.vmem [shape: f32[2,1,128], index: 13, kind: input, shape index: {}]   ;;  %s4962_s14 = inlined_call_operand.hbm [shape: f32[2,16,128], index: 14, kind: output, shape index: {}]  }
   0x1   :  { %4972 = sst [smem:[#allocation23_spill]] %s4948_s0 }
   0x2   :  { %4973 = sst [smem:[#allocation24_spill]] %s4949_s1 }
   0x3   :  { %4974 = sst [smem:[#allocation25_spill]] %s4950_s2 }
   0x4   :  { %4975 = sst [smem:[#allocation26_spill]] %s4951_s3 }
   0x5   :  { %4976 = sst [smem:[#allocation27_spill]] %s4952_s4 }
   0x6   :  { %4977 = sst [smem:[#allocation28_spill]] %s4953_s5 }
   0x7   :  { %4978 = sst [smem:[#allocation29_spill]] %s4954_s6 }
   0x8   :  { %4979 = sst [smem:[#allocation30_spill]] %s4955_s7 }
   0x9   :  { %4980 = sst [smem:[#allocation31_spill]] %s4956_s8 }
   0xa   :  { %4981 = sst [smem:[#allocation32_spill]] %s4957_s9 }
   0xb   :  { %4982 = sst [smem:[#allocation33_spill]] %s4958_s10 }
   0xc   :  { %4983 = sst [smem:[#allocation34_spill]] %s4959_s11 }
   0xd   :  { %4984 = sst [smem:[#allocation35_spill]] %s4960_s12 }
   0xe   :  { %4985 = sst [smem:[#allocation36_spill]] %s4961_s13 }
   0xf   :  { %4986 = sst [smem:[#allocation37_spill]] %s4962_s14 }
  0x10   :  { %19 = vsyncpa [#allocation4], 0 }
  0x11   :  { %20 = vsyncpa [#allocation7], 0 }
  0x12   :  { %21 = vsyncpa [#allocation5], 0  ;;  %s4313_s29 = smov 0   ;;  %s4315_s30 = smov 0  }
  0x13   :  { %s4317_s15 = smov 0   ;;  %s4319_s16 = smov 0  }
  0x14   :  { %s4321_s17 = smov 0   ;;  %s4323_s18 = smov 0  }
  0x15 LB: > { %4987 = sst [smem:[#allocation19_spill]] %s4207_s16  ;;  %s4342_s19 = sadd.s32 4294967295, %s4215_s18   ;;  %s4215_s18 = sphi %s4323_s18, %s27_s18   ;;  %s4211_s17 = sphi %s4321_s17, %s5034_s17   ;;  %s4207_s16 = sphi %s4319_s16, %s5033_s16   ;;  %s4203_s15 = sphi %s4317_s15, %s5032_s15   ;;  %s4199_s30 = sphi %s4315_s30, %s5031_s30   ;;  %s4195_s29 = sphi %s4313_s29, %s5030_s29  }
  0x16   : > { %4988 = sst [smem:[#allocation20_spill]] %s4215_s18  ;;  %p100_p0 = scmp.ne.s32.totalorder %s4203_s15, %s4199_s30 }
  0x17   : > { %p101_p1 = scmp.eq.s32.totalorder %s4215_s18, 0  ;;  %p106_p2 = scmp.ne.s32.totalorder %s4199_s30, %s4195_s29 }
  0x18   : > { %p4963_p3 = scmp.eq.s32.totalorder %s4342_s19, 0  ;;  %p3202_p5 = scmp.ge.s32.totalorder %s4215_s18, 1 }
  0x19   : > { %p102_p4 = por %p101_p1, %p100_p0  ;;  %p429_p7 = scmp.lt.s32.totalorder %s4215_s18, 3 }
  0x1a   : > { %p4353_p6 = por %p4963_p3, %p106_p2  ;;  %s4217_s23 = smov [#allocation3]  }
  0x1b   : > { %p4358_p8 = pnand %p3202_p5, %p429_p7  ;;  %s445_s24 = sshll.u32 %s4217_s23, 4  ;;  %s446_s24 = int_to_ptr.vmem [resolvable:$true] %s445_s24 }
  0x1c   : > { %p3685_p10 = scmp.lt.s32.totalorder %s4215_s18, 2  ;;  %s36_s27 = sadd.s32 1, %s4211_s17 }
  0x1d   : > { %p3657_p9 = pneg %p4358_p8  ;;  %s3920_s28 = scalar_lea.vmem %s446_s24, 512 }
  0x1e   : > { %p4371_p12 = pnand %p3685_p10, %p102_p4  ;;  %p3921_p0 = scmp.ne.s32.totalorder %s446_s24, %s3920_s28 }
  0x1f   : > { %p4367_p11 = pnand %p3657_p9, %p4963_p3  ;;  %p3928_p5 = scmp.lt.s32.totalorder %s446_s24, %s446_s24 }
  0x20   : > { %p3929_p7 = scmp.lt.s32.totalorder %s3920_s28, %s3920_s28 }
  0x21   : > { %p3911_p13 = pneg %p4367_p11 }
  0x22   : > { %p3930_p9 = por %p3929_p7, %p3928_p5 }
  0x23   : > { %p3923_p1 = pnand %p3921_p0, %p3911_p13 }
  0x25   : > { %p3924_p2 = pneg %p3923_p1 }
  0x27   : > { %p3931_p3 = pnand %p3930_p9, %p3924_p2 }
  0x29   : > { %3934 = shalt.err (!%p3931_p3)
}
  0x2a   : > { %s4964_s29 = smov 128   ;;  %s4966_s23 = smov 8  }
  0x2b   : > { %s4993_s0 = sld [smem:[#allocation23_spill]]  ;;  %p37_p3 = scmp.ge.s32.totalorder %s36_s27, 2 }
  0x2c   : > { %s472_s28 = sand.u32 1, %s4215_s18   ;;  %s4968_s13 = sand.u32 1, %s4203_s15  }
  0x2d   : > { %s5036_s27 = smov (%p37_p3, %s36_s27), 0  ;;  %s4395_s12 = sshll.u32 %s4968_s13, 6 }
  0x2e   : > { %4994 = sst [smem:[#allocation21_spill]] %s5036_s27  ;;  %s90_s11 = ssub.s32 %s4211_s17, %s5036_s27 }
  0x2f   : > { %p91_p4 = scmp.eq.s32.totalorder %s90_s11, 0  ;;  %s4400_s10 = sshll.u32 %s4211_s17, 10 }
  0x30   : > { %s4995_s2 = sld [smem:[#allocation25_spill]]  ;;  %s476_s20 = scalar_lea.vmem [#allocation8], %s4395_s12 }
  0x31   : > { %3660 = dma.hbm_to_vmem [thread:$0]  (!%p4367_p11), %s4993_s0, 512, %s446_s24, [#allocation4], %s4964_s29, %s4964_s29, %s4966_s23  }
  0x32   : > { %s483_s24 = sshll.u32 %s476_s20, 4  ;;  %s4996_s29 = sadd.s32 1, %s4203_s15  ;;  %s484_s24 = int_to_ptr.vmem [resolvable:$true] %s483_s24 }
  0x33   : > { %s4410_s23 = scalar_select %p91_p4, %s4203_s15, %s4996_s29  }
  0x34   : > { %s4412_s0 = scalar_lea.sflag [#allocation4], %s472_s28  ;;  %p4416_p10 = pneg %p4371_p12 }
  0x35   : > { %4997 = sst [smem:[#allocation22_spill]] %s4410_s23  ;;  %s3948_s11 = scalar_lea.vmem %s484_s24, 1024 }
  0x36   : > { %s482_s14 = scalar_lea.hbm %s4995_s2, %s4400_s10  ;;  %p3949_p0 = scmp.ne.s32.totalorder %s484_s24, %s3948_s11 }
  0x37   : > { %s4220_s7 = smov [#allocation8]  }
  0x38   : > { %p3951_p1 = pnand %p3949_p0, %p4416_p10  ;;  %s3953_s9 = sshll.u32 %s4220_s7, 4  ;;  %s3954_s9 = int_to_ptr.vmem [resolvable:$false] %s3953_s9 }
  0x39   : > { %s3955_s20 = scalar_lea.vmem %s3954_s9, 2048  ;;  %p3956_p5 = scmp.lt.s32.totalorder %s484_s24, %s3954_s9 }
  0x3a   : > { %p3952_p2 = pneg %p3951_p1  ;;  %p3957_p7 = scmp.lt.s32.totalorder %s3955_s20, %s3948_s11 }
  0x3c   : > { %p3958_p9 = por %p3957_p7, %p3956_p5 }
  0x3e   : > { %p3959_p3 = pnand %p3958_p9, %p3952_p2 }
  0x40   : > { %3962 = shalt.err (!%p3959_p3)
}
  0x41   : > { %s4221_s29 = smov 64   ;;  %s4222_s28 = smov 4  }
  0x42   : > { %3667 = dma.hbm_to_vmem [thread:$0]  (!%p4371_p12), %s482_s14, 1024, %s484_s24, %s4412_s0, %s4221_s29, %s4221_s29, %s4222_s28  }
  0x43   : > { %s4999_s3 = sld [smem:[#allocation26_spill]]  ;;  %s497_s11 = scalar_lea.vmem [#allocation9], %s4395_s12 }
  0x44   : > { %s504_s20 = sshll.u32 %s497_s11, 4  ;;  %s4223_s23 = smov [#allocation9]   ;;  %s505_s20 = int_to_ptr.vmem [resolvable:$true] %s504_s20 }
  0x45   : > { %s3976_s27 = scalar_lea.vmem %s505_s20, 1024  ;;  %s3981_s18 = sshll.u32 %s4223_s23, 4  ;;  %s3982_s18 = int_to_ptr.vmem [resolvable:$false] %s3981_s18 }
  0x46   : > { %p3977_p4 = scmp.ne.s32.totalorder %s505_s20, %s3976_s27  ;;  %s3983_s16 = scalar_lea.vmem %s3982_s18, 2048 }
  0x47   : > { %p3984_p2 = scmp.lt.s32.totalorder %s505_s20, %s3982_s18  ;;  %p3985_p5 = scmp.lt.s32.totalorder %s3983_s16, %s3976_s27 }
  0x48   : > { %p3979_p0 = pnand %p3977_p4, %p4416_p10 }
  0x49   : > { %s503_s9 = scalar_lea.hbm %s4999_s3, %s4400_s10  ;;  %p3986_p7 = por %p3985_p5, %p3984_p2 }
  0x4a   : > { %p3980_p1 = pneg %p3979_p0 }
  0x4c   : > { %p3987_p9 = pnand %p3986_p7, %p3980_p1 }
  0x4e   : > { %3990 = shalt.err (!%p3987_p9)
}
  0x4f   : > { %3670 = dma.hbm_to_vmem [thread:$0]  (!%p4371_p12), %s503_s9, 1024, %s505_s20, %s4412_s0, %s4221_s29, %s4221_s29, %s4222_s28  }
  0x50   : > { %s5000_s4 = sld [smem:[#allocation27_spill]]  ;;  %s518_s24 = scalar_lea.vmem [#allocation10], %s4395_s12 }
  0x51   : > { %s525_s18 = sshll.u32 %s518_s24, 4  ;;  %s4224_s27 = smov [#allocation10]   ;;  %s526_s18 = int_to_ptr.vmem [resolvable:$true] %s525_s18 }
  0x52   : > { %s4004_s16 = scalar_lea.vmem %s526_s18, 1024  ;;  %s4009_s7 = sshll.u32 %s4224_s27, 4  ;;  %s4010_s7 = int_to_ptr.vmem [resolvable:$false] %s4009_s7 }
  0x53   : > { %p4005_p3 = scmp.ne.s32.totalorder %s526_s18, %s4004_s16  ;;  %s4011_s11 = scalar_lea.vmem %s4010_s7, 2048 }
  0x54   : > { %p4012_p1 = scmp.lt.s32.totalorder %s526_s18, %s4010_s7  ;;  %p4013_p2 = scmp.lt.s32.totalorder %s4011_s11, %s4004_s16 }
  0x55   : > { %p4007_p4 = pnand %p4005_p3, %p4416_p10 }
  0x56   : > { %s524_s23 = scalar_lea.hbm %s5000_s4, %s4400_s10  ;;  %p4014_p5 = por %p4013_p2, %p4012_p1 }
  0x57   : > { %p4008_p0 = pneg %p4007_p4 }
  0x59   : > { %p4015_p7 = pnand %p4014_p5, %p4008_p0 }
  0x5b   : > { %4018 = shalt.err (!%p4015_p7)
}
  0x5c   : > { %3673 = dma.hbm_to_vmem [thread:$0]  (!%p4371_p12), %s524_s23, 1024, %s526_s18, %s4412_s0, %s4221_s29, %s4221_s29, %s4222_s28  }
  0x5d   : > { %s5001_s5 = sld [smem:[#allocation28_spill]]  ;;  %s539_s14 = scalar_lea.vmem [#allocation11], %s4395_s12 }
  0x5e   : > { %s546_s24 = sshll.u32 %s539_s14, 4  ;;  %s5002_s16 = sand.u32 1, %s4203_s15   ;;  %s547_s24 = int_to_ptr.vmem [resolvable:$true] %s546_s24 }
  0x5f   : > { %s4461_s27 = sshll.u32 %s5002_s16, 7  ;;  %s4032_s7 = scalar_lea.vmem %s547_s24, 1024 }
  0x60   : > { %p4033_p9 = scmp.ne.s32.totalorder %s547_s24, %s4032_s7  ;;  %s4225_s11 = smov [#allocation11]  }
  0x61   : > { %s4037_s3 = sshll.u32 %s4225_s11, 4  ;;  %s4038_s3 = int_to_ptr.vmem [resolvable:$false] %s4037_s3 }
  0x62   : > { %p4035_p3 = pnand %p4033_p9, %p4416_p10  ;;  %s4039_s4 = scalar_lea.vmem %s4038_s3, 2048 }
  0x63   : > { %s545_s2 = scalar_lea.hbm %s5001_s5, %s4400_s10  ;;  %p4040_p0 = scmp.lt.s32.totalorder %s547_s24, %s4038_s3 }
  0x64   : > { %p4036_p4 = pneg %p4035_p3  ;;  %p4041_p1 = scmp.lt.s32.totalorder %s4039_s4, %s4032_s7 }
  0x66   : > { %p4042_p2 = por %p4041_p1, %p4040_p0 }
  0x68   : > { %p4043_p5 = pnand %p4042_p2, %p4036_p4 }
  0x6a   : > { %4046 = shalt.err (!%p4043_p5)
}
  0x6b   : > { %3676 = dma.hbm_to_vmem [thread:$0]  (!%p4371_p12), %s545_s2, 1024, %s547_s24, %s4412_s0, %s4221_s29, %s4221_s29, %s4222_s28  }
  0x6c   : > { %s3337_s10 = sshll.u32 %s4211_s17, 11  ;;  %s5003_s6 = sld [smem:[#allocation29_spill]] }
  0x6d   : > { %s560_s3 = scalar_lea.vmem [#allocation12], %s4461_s27  ;;  %s4226_s20 = smov [#allocation12]  }
  0x6e   : > { %s567_s4 = sshll.u32 %s560_s3, 4  ;;  %s4065_s14 = sshll.u32 %s4226_s20, 4  ;;  %s568_s4 = int_to_ptr.vmem [resolvable:$true] %s567_s4  ;;  %s4066_s14 = int_to_ptr.vmem [resolvable:$false] %s4065_s14 }
  0x6f   : > { %s4060_s9 = scalar_lea.vmem %s568_s4, 2048  ;;  %s4067_s16 = scalar_lea.vmem %s4066_s14, 4096 }
  0x70   : > { %p4061_p7 = scmp.ne.s32.totalorder %s568_s4, %s4060_s9  ;;  %p4068_p4 = scmp.lt.s32.totalorder %s568_s4, %s4066_s14 }
  0x71   : > { %p4069_p0 = scmp.lt.s32.totalorder %s4067_s16, %s4060_s9 }
  0x72   : > { %s566_s18 = scalar_lea.hbm %s5003_s6, %s3337_s10  ;;  %p4063_p9 = pnand %p4061_p7, %p4416_p10 }
  0x73   : > { %p4070_p1 = por %p4069_p0, %p4068_p4 }
  0x74   : > { %p4064_p3 = pneg %p4063_p9 }
  0x76   : > { %p4071_p2 = pnand %p4070_p1, %p4064_p3 }
  0x78   : > { %4074 = shalt.err (!%p4071_p2)
}
  0x79   : > { %s5004_s2 = smov 8   ;;  %s5005_s24 = smov 128  }
  0x7a   : > { %3679 = dma.hbm_to_vmem [thread:$0]  (!%p4371_p12), %s566_s18, 2048, %s568_s4, %s4412_s0, %s5005_s24, %s5005_s24, %s5004_s2  }
  0x7b   : > { %s4227_s7 = smov [#allocation6]   ;;  %s5006_s8 = sld [smem:[#allocation31_spill]] }
  0x7c   : > { %s458_s11 = sshll.u32 %s4227_s7, 4  ;;  %s459_s11 = int_to_ptr.vmem [resolvable:$true] %s458_s11 }
  0x7d   : > { %s4086_s9 = scalar_lea.vmem %s459_s11, 256  ;;  %p4094_p3 = scmp.lt.s32.totalorder %s459_s11, %s459_s11 }
  0x7e   : > { %p4087_p5 = scmp.ne.s32.totalorder %s459_s11, %s4086_s9  ;;  %p4095_p4 = scmp.lt.s32.totalorder %s4086_s9, %s4086_s9 }
  0x80   : > { %p4089_p7 = pnand %p4087_p5, %p3911_p13  ;;  %p4096_p0 = por %p4095_p4, %p4094_p3 }
  0x81   : > { %s4487_s3 = scalar_lea.hbm %s5006_s8, %s3337_s10 }
  0x82   : > { %p4090_p9 = pneg %p4089_p7 }
  0x84   : > { %p4097_p1 = pnand %p4096_p0, %p4090_p9 }
  0x86   : > { %4100 = shalt.err (!%p4097_p1)
}
  0x87   : > { %s5007_s1 = sld [smem:[#allocation24_spill]]  ;;  %s588_s10 = scalar_lea.vmem [#allocation13], %s4461_s27 }
  0x88   : > { %s595_s20 = sshll.u32 %s588_s10, 4  ;;  %s4228_s16 = smov [#allocation13]   ;;  %s596_s20 = int_to_ptr.vmem [resolvable:$true] %s595_s20 }
  0x89   : > { %s4114_s14 = scalar_lea.vmem %s596_s20, 2048  ;;  %s4119_s7 = sshll.u32 %s4228_s16, 4  ;;  %s4120_s7 = int_to_ptr.vmem [resolvable:$false] %s4119_s7 }
  0x8a   : > { %p4115_p13 = scmp.ne.s32.totalorder %s596_s20, %s4114_s14  ;;  %s4121_s25 = scalar_lea.vmem %s4120_s7, 4096 }
  0x8b   : > { %p4122_p7 = scmp.lt.s32.totalorder %s596_s20, %s4120_s7  ;;  %p4123_p9 = scmp.lt.s32.totalorder %s4121_s25, %s4114_s14 }
  0x8c   : > { %p4117_p2 = pnand %p4115_p13, %p4416_p10 }
  0x8d   : > { %3663 = dma.hbm_to_vmem [thread:$0]  (!%p4367_p11), %s5007_s1, 256, %s459_s11, [#allocation7], %s5005_s24, %s5005_s24, %s5004_s2  }
  0x8e   : > { %p4118_p5 = pneg %p4117_p2  ;;  %p4124_p3 = por %p4123_p9, %p4122_p7 }
  0x90   : > { %p4125_p4 = pnand %p4124_p3, %p4118_p5 }
  0x92   : > { %4128 = shalt.err (!%p4125_p4)
}
  0x93   : > { %3682 = dma.hbm_to_vmem [thread:$0]  (!%p4371_p12), %s4487_s3, 2048, %s596_s20, %s4412_s0, %s4221_s29, %s4221_s29, %s4222_s28  }
  0x94   : > { %637 = sbr.rel (%p4358_p8) target bundleno = 4412 (0x113c), region = 76  ;;  %p5008_p11 = scmp.eq.s32.totalorder (!%p4358_p8), %s4342_s19, 0 }
  0x99   : > { %4178 = dma.done.wait (%p5008_p11), [#allocation4], 512   ;;  %p5009_p10 = pmov %p5008_p11 }
  0x9b   : > { %4180 = vsyncadd (%p5009_p10), [#allocation4], 4294966784  ;;  %p5010_p0 = pmov %p5009_p10 }
  0x9d   : > { %4182 = dma.done.wait (%p5010_p0), [#allocation7], 256   ;;  %p5011_p1 = pmov %p5010_p0 }
  0x9e   : > { %s647_s13 = sand.u32 1, %s4342_s19   ;;  %s649_s0 = sand.u32 1, %s4199_s30  }
  0x9f   : > { %4184 = vsyncadd (%p5011_p1), [#allocation7], 4294967040  ;;  %s3227_s26 = sshll.u32 %s649_s0, 6  ;;  %s648_s22 = scalar_lea.sflag [#allocation4], %s647_s13 }
  0xa0   : > { %s4522_s29 = scalar_lea.vmem [#allocation8], %s3227_s26 }
  0xa1   : > { %4186 = dma.done.wait (%p4353_p6), %s648_s22, 8192  }
  0xa2   : > { %4188 = vsyncadd (%p4353_p6), %s648_s22, 4294959104  ;;  %s5012_s28 = sld [smem:[#allocation19_spill]]  ;;  %s3231_s27 = sshll.u32 %s649_s0, 7 }
  0xa3   : > { %s5014_s18 = sld [smem:[#allocation30_spill]]  ;;  %s4558_s3 = scalar_lea.vmem [#allocation9], %s3227_s26 }
  0xa4   : > { %s5015_s14 = sld [smem:[#allocation33_spill]]  ;;  %s4562_s9 = scalar_lea.vmem [#allocation11], %s3227_s26 }
  0xa5   : > { %s5016_s13 = sld [smem:[#allocation34_spill]]  ;;  %s4564_s21 = scalar_lea.vmem [#allocation12], %s3231_s27 }
  0xa6   : > { %s5017_s5 = sld [smem:[#allocation35_spill]] }
  0xa7   : > { %s5018_s12 = sld [smem:[#allocation36_spill]] }
  0xa8   : > { %p781_p8 = scmp.lt.s32.totalorder %s5012_s28, 1  ;;  %p3234_p6 = scmp.ne.s32.totalorder %s5012_s28, 0 }
  0xaa   : > { %s4530_s2 = scalar_select %p781_p8, %s5012_s28, 1 }
  0xab   : > { %805 = sbr.rel (%p3234_p6) target bundleno = 182 (0xb6), region = 112 }
  0xac   : > { %s3233_s24 = sshll.u32 %s4530_s2, 1  ;;  %s790_s16 = scalar_lea.vmem %s5015_s14, %s4530_s2 }
  0xad   : > { %s4540_s4 = scalar_lea.vmem %s5014_s18, %s3233_s24  ;;  %s793_s0 = scalar_lea.vmem %s5016_s13, %s4530_s2 }
  0xae   : > { %s796_s6 = scalar_lea.vmem %s5017_s5, %s4530_s2  ;;  %s799_s23 = scalar_lea.vmem %s5018_s12, %s4530_s2 }
  0xaf   : > { %s4560_s24 = scalar_lea.vmem [#allocation10], %s3227_s26  ;;  %s4566_s18 = scalar_lea.vmem [#allocation13], %s3231_s27 }
  0xb0   : > { %v806_v0 = vld [vmem:[#allocation3] sm:$0xff]  ;;  %v807_v2 = vld [vmem:[#allocation3 + $0x8] sm:$0xff]  ;;  %v808_v5 = vld [vmem:[#allocation3 + $0x10] sm:$0xff] }
  0xb1   : > { %v810_v1 = vld [vmem:[#allocation6] sm:$0xff]  ;;  %v811_v4 = vld [vmem:[#allocation6 + $0x8] sm:$0xff]  ;;  %v809_v6 = vld [vmem:[#allocation3 + $0x18] sm:$0xff] }
  0xb2   : > { %v812_v3 = vadd.f32 %v810_v1, %v806_v0  ;;  %v813_v7 = vadd.f32 %v811_v4, %v807_v2  ;;  %v814_v8 = vadd.f32 %v810_v1, %v808_v5  ;;  %v815_v9 = vadd.f32 %v811_v4, %v809_v6 }
  0xb4   : > { %816 = vst [vmem:[#allocation2 + $0x10] sm:$0xff] %v812_v3  ;;  %817 = vst [vmem:[#allocation2] sm:$0xff] %v813_v7 }
  0xb5   : > { %818 = vst [vmem:[#allocation2 + $0x18] sm:$0xff] %v814_v8  ;;  %819 = vst [vmem:[#allocation2 + $0x8] sm:$0xff] %v815_v9 }
  0xb6 PF: > { %v3753_v10 = vld [vmem:[%s4558_s3 + $0x38] sm:$0xff]   ;;  %v3755_v12 = vld [vmem:[%s4558_s3 + $0x30] sm:$0xff]   ;;  %v3757_v14 = vld [vmem:[%s4558_s3 + $0x28] sm:$0xff]   ;;  %v4229_v32 = vmov 0.0   ;;  %vm4230_vm0 = vmmov 0   ;;  %vm1191_vm1 = vcmask 261120  }
  0xb7   : > { %v3754_v11 = vld [vmem:[%s4522_s29 + $0x38] sm:$0xff]   ;;  %3465 = vmatprep.subr.bf16.mxu1 %v3753_v10  ;;  %v3756_v13 = vld [vmem:[%s4522_s29 + $0x30] sm:$0xff]   ;;  %v3758_v15 = vld [vmem:[%s4522_s29 + $0x28] sm:$0xff]   ;;  %vm1286_vm2 = vcmask 130048   ;;  %s4231_s1 = smov 96   ;;  %s4232_s5 = smov 64  }
  0xb8   : > { %3445 = vmatprep.subr.bf16.mxu0 %v3754_v11  ;;  %3466 = vmatpush3.bf16.msra.mxu1 %v3753_v10  ;;  %v3759_v16 = vld [vmem:[%s4558_s3 + $0x20] sm:$0xff]   ;;  %v3761_v18 = vld [vmem:[%s4558_s3 + $0x18] sm:$0xff]   ;;  %v3763_v20 = vld [vmem:[%s4558_s3 + $0x10] sm:$0xff]   ;;  %s4233_s8 = smov 32   ;;  %s5021_s14 = sld [smem:[#allocation32_spill]] }
  0xb9   : > { %3446 = vmatpush3.bf16.msra.mxu0 %v3754_v11  ;;  %3467 = vmatprep.subr.bf16.mxu1 %v3755_v12  ;;  %v3760_v17 = vld [vmem:[%s4522_s29 + $0x20] sm:$0xff]   ;;  %v3762_v19 = vld [vmem:[%s4522_s29 + $0x18] sm:$0xff]   ;;  %v3764_v23 = vld [vmem:[%s4522_s29 + $0x10] sm:$0xff]  }
  0xba   : > { %3447 = vmatprep.subr.bf16.mxu0 %v3756_v13  ;;  %v3765_v25 = vld [vmem:[%s4558_s3 + $0x8] sm:$0xff]   ;;  %v3767_v27 = vld [vmem:[%s4558_s3] sm:$0xff]   ;;  %v3769_v51 = vld [vmem:[%s4560_s24 + $0x38] sm:$0xff]  }
  0xbb   : > { %v820_v21 = vld [vmem:[#allocation2 + $0x10] sm:$0xff]  ;;  %v821_v22 = vld [vmem:[#allocation2] sm:$0xff]  ;;  %v3766_v26 = vld [vmem:[%s4522_s29 + $0x8] sm:$0xff]  }
  0xbc   : > { %3468 = vmatpush3.bf16.msra.mxu1 %v3755_v12  ;;  %v824_v24 = vpack.c.bf16 %v821_v22, %v820_v21  ;;  %v3768_v28 = vld [vmem:[%s4522_s29] sm:$0xff]   ;;  %v822_v29 = vld [vmem:[#allocation2 + $0x18] sm:$0xff]  ;;  %v823_v30 = vld [vmem:[#allocation2 + $0x8] sm:$0xff] }
  0xbd   : > { %3448 = vmatpush3.bf16.msra.mxu0 %v3756_v13  ;;  %3469 = vmatprep.subr.bf16.mxu1 %v3757_v14  ;;  %v825_v31 = vpack.c.bf16 %v823_v30, %v822_v29  ;;  %v3770_v52 = vld [vmem:[%s4560_s24 + $0x30] sm:$0xff]   ;;  %v3771_v53 = vld [vmem:[%s4560_s24 + $0x28] sm:$0xff]   ;;  %v3772_v54 = vld [vmem:[%s4560_s24 + $0x20] sm:$0xff]  }
  0xbe   : > { %3449 = vmatprep.subr.bf16.mxu0 %v3758_v15  ;;  %3481 = vmatprep.mubr.bf16.mxu1 %v824_v24  ;;  %v3773_v55 = vld [vmem:[%s4560_s24 + $0x18] sm:$0xff]   ;;  %v3774_v56 = vld [vmem:[%s4560_s24 + $0x10] sm:$0xff]   ;;  %v3775_v57 = vld [vmem:[%s4560_s24 + $0x8] sm:$0xff]  }
  0xbf   : > { %3461 = vmatprep.mubr.bf16.mxu0 %v824_v24  ;;  %v3776_v58 = vld [vmem:[%s4560_s24] sm:$0xff]  }
  0xc0   : > { %3470 = vmatpush3.bf16.msra.mxu1 %v3757_v14 }
  0xc1   : > { %3450 = vmatpush3.bf16.msra.mxu0 %v3758_v15  ;;  %3471 = vmatprep.subr.bf16.mxu1 %v3759_v16 }
  0xc2   : > { %3451 = vmatprep.subr.bf16.mxu0 %v3760_v17 }
  0xc4   : > { %3472 = vmatpush3.bf16.msra.mxu1 %v3759_v16 }
  0xc5   : > { %3452 = vmatpush3.bf16.msra.mxu0 %v3760_v17  ;;  %3473 = vmatprep.subr.bf16.mxu1 %v3761_v18 }
  0xc6   : > { %3453 = vmatprep.subr.bf16.mxu0 %v3762_v19 }
  0xc8   : > { %3474 = vmatpush3.bf16.msra.mxu1 %v3761_v18 }
  0xc9   : > { %3454 = vmatpush3.bf16.msra.mxu0 %v3762_v19  ;;  %3475 = vmatprep.subr.bf16.mxu1 %v3763_v20 }
  0xca   : > { %3455 = vmatprep.subr.bf16.mxu0 %v3764_v23 }
  0xcc   : > { %3476 = vmatpush3.bf16.msra.mxu1 %v3763_v20 }
  0xcd   : > { %3456 = vmatpush3.bf16.msra.mxu0 %v3764_v23  ;;  %3477 = vmatprep.subr.bf16.mxu1 %v3765_v25 }
  0xce   : > { %3457 = vmatprep.subr.bf16.mxu0 %v3766_v26 }
  0xd0   : > { %3478 = vmatpush3.bf16.msra.mxu1 %v3765_v25 }
  0xd1   : > { %3458 = vmatpush3.bf16.msra.mxu0 %v3766_v26  ;;  %3479 = vmatprep.subr.bf16.mxu1 %v3767_v27 }
  0xd2   : > { %3459 = vmatprep.subr.bf16.mxu0 %v3768_v28 }
  0xd4   : > { %3480 = vmatpush3.bf16.msra.mxu1 %v3767_v27 }
  0xd5   : > { %3460 = vmatpush3.bf16.msra.mxu0 %v3768_v28  ;;  %3505 = vmatprep.subr.bf16.mxu1 %v4229_v32 }
  0xd6   : > { %3485 = vmatprep.subr.bf16.mxu0 %v3769_v51 }
  0xd7   : > { %3482 = vmatmul.mubr.bf16.vlgmr.msra.gmra.mxu1 %v825_v31 }
  0xd8   : > { %3462 = vmatmul.mubr.bf16.vlgmr.msra.gmra.mxu0 %v825_v31  ;;  %3507 = vmatprep.mubr.msk.bf16.mxu1 %vm4230_vm0, %v4229_v32 }
  0xd9   : > { %3501 = vmatprep.mubr.bf16.mxu0 %v824_v24  ;;  %3486 = vmatpush3.bf16.msra.mxu0 %v3769_v51 }
  0xda   : > { %3487 = vmatprep.subr.bf16.mxu0 %v3770_v52 }
  0xdd   : > { %3488 = vmatpush3.bf16.msra.mxu0 %v3770_v52 }
  0xde   : > { %3489 = vmatprep.subr.bf16.mxu0 %v3771_v53 }
  0xe1   : > { %3490 = vmatpush3.bf16.msra.mxu0 %v3771_v53 }
  0xe2   : > { %3491 = vmatprep.subr.bf16.mxu0 %v3772_v54 }
  0xe5   : > { %3492 = vmatpush3.bf16.msra.mxu0 %v3772_v54 }
  0xe6   : > { %3493 = vmatprep.subr.bf16.mxu0 %v3773_v55 }
  0xe9   : > { %3494 = vmatpush3.bf16.msra.mxu0 %v3773_v55 }
  0xea   : > { %3495 = vmatprep.subr.bf16.mxu0 %v3774_v56 }
  0xed   : > { %3496 = vmatpush3.bf16.msra.mxu0 %v3774_v56 }
  0xee   : > { %3497 = vmatprep.subr.bf16.mxu0 %v3775_v57 }
  0xf1   : > { %3498 = vmatpush3.bf16.msra.mxu0 %v3775_v57 }
  0xf2   : > { %3499 = vmatprep.subr.bf16.mxu0 %v3776_v58 }
  0xf5   : > { %3500 = vmatpush3.bf16.msra.mxu0 %v3776_v58 }
  0xf6   : > { %3529 = vmatprep.subr.bf16.mxu0 %v4229_v32 }
  0xf8   : > { %3502 = vmatmul.mubr.bf16.vlgmr.msra.gmra.mxu0 %v825_v31 }
  0xf9   : > { %3531 = vmatprep.mubr.msk.bf16.mxu0 %vm4230_vm0, %v4229_v32 }
 0x197   : > { %v3483_v33 = vpop.f32.mrf.mxu1 }
 0x198   : > { %v3463_v34 = vpop.f32.mrf.mxu0 }
 0x199   : > { %v1041_v35 = vpop.f32.mrf.mxu1  ;;  %v941_v48 = vmul.f32 0.17677669, %v3463_v34 }
 0x19a   : > { %v924_v36 = vpop.f32.mrf.mxu0 }
 0x19b   : > { %v3484_v37 = vpop.f32.mrf.mxu1  ;;  %v939_v43 = vmul.f32 0.17677669, %v924_v36 }
 0x19c   : > { %v3464_v38 = vpop.f32.mrf.mxu0  ;;  %v4593_v45 = vpack.c.bf16 %v3484_v37, %v3483_v33 }
 0x19d   : > { %v1044_v39 = vpop.f32.mrf.mxu1  ;;  %v942_v49 = vmul.f32 0.17677669, %v3464_v38 }
 0x19e   : > { %v4588_v40 = vpack.c.bf16 %v1044_v39, %v1041_v35  ;;  %v927_v41 = vpop.f32.mrf.mxu0  ;;  %v1243_v47 = vsel %vm1191_vm1, %v4593_v45, 0 }
 0x19f   : > { %v940_v44 = vmul.f32 0.17677669, %v927_v41  ;;  %v4604_v50 = vpack.c.bf16 %v942_v49, %v941_v48 }
 0x1a0   : > { %v1196_v42 = vsel %vm1191_vm1, %v4588_v40, 0 }
 0x1a1   : > { %3506 = vmatpush3.bf16.xpose.msra.mxu1 %v1196_v42  ;;  %v4595_v46 = vpack.c.bf16 %v940_v44, %v939_v43 }
 0x1a2   : > { %3511 = vmatprep.subr.bf16.mxu1 %v4229_v32 }
 0x1a8   : > { %3508 = vmatmul.mubr.msk.bf16.vlgmr.msra.gmra.mxu1 %vm1191_vm1, %v4595_v46 }
 0x1a9   : > { %3512 = vmatpush3.bf16.xpose.msra.mxu1 %v1243_v47  ;;  %3513 = vmatprep.mubr.msk.bf16.mxu1 %vm4230_vm0, %v4229_v32 }
 0x1aa   : > { %3517 = vmatprep.subr.bf16.mxu1 %v4229_v32 }
 0x1b0   : > { %3514 = vmatmul.mubr.msk.bf16.vlgmr.msra.gmra.mxu1 %vm1191_vm1, %v4604_v50 }
 0x1b1   : > { %3519 = vmatprep.mubr.msk.bf16.mxu1 %vm4230_vm0, %v4229_v32 }
 0x1b8   : > { %v3503_v22 = vpop.f32.mrf.mxu0 }
 0x1ba   : > { %v1154_v23 = vpop.f32.mrf.mxu0 }
 0x1bc   : > { %v3504_v24 = vpop.f32.mrf.mxu0 }
 0x1bd   : > { %v4630_v25 = vpack.c.bf16 %v3504_v24, %v3503_v22 }
 0x1be   : > { %v1157_v26 = vpop.f32.mrf.mxu0 }
 0x1bf   : > { %v4632_v27 = vpack.c.bf16 %v1157_v26, %v1154_v23 }
 0x1c1   : > { %3518 = vmatpush3.bf16.msra.mxu1 %v4632_v27 }
 0x1c2   : > { %3523 = vmatprep.subr.bf16.mxu1 %v4229_v32 }
 0x268   : > { %v1232_v59 = vpop.f32.mrf.mxu1 }
 0x269   : > { %v1287_v60 = vsel %vm1286_vm2, %v1232_v59, -inf }
 0x26a   : > { %1288 = vmax.xlane.f32.xlu0 %v1287_v60  ;;  %v3509_v61 = vpop.f32.mrf.mxu1 }
 0x26c   : > { %v1235_v62 = vpop.f32.mrf.mxu1 }
 0x26d   : > { %v1290_v63 = vsel %vm1286_vm2, %v1235_v62, -inf }
 0x26e   : > { %1291 = vmax.xlane.f32.xlu0 %v1290_v63  ;;  %v3510_v0 = vpop.f32.mrf.mxu1 }
 0x270   : > { %v1279_v1 = vpop.f32.mrf.mxu1 }
 0x271   : > { %v1293_v2 = vsel %vm1286_vm2, %v1279_v1, -inf }
 0x272   : > { %1294 = vmax.xlane.f32.xlu1 %v1293_v2  ;;  %v3515_v3 = vpop.f32.mrf.mxu1 }
 0x274   : > { %v1282_v4 = vpop.f32.mrf.mxu1 }
 0x275   : > { %v1296_v5 = vsel %vm1286_vm2, %v1282_v4, -inf }
 0x276   : > { %1297 = vmax.xlane.f32.xlu1 %v1296_v5  ;;  %v3516_v6 = vpop.f32.mrf.mxu1 }
 0x2f3   : > { %v1289_v7 = vpop.xlane.xlu0 %1288 }
 0x2f4   : > { %v1299_v8 = vsub.f32 %v1232_v59, %v1289_v7 }
 0x2f6   : > { %v1303_v9 = vmul.f32 1.442695, %v1299_v8 }
 0x2f7   : > { %v1292_v10 = vpop.xlane.xlu0 %1291 }
 0x2f8   : > { %3825 = vpow2.f32 %v1303_v9  ;;  %v1300_v11 = vsub.f32 %v1235_v62, %v1292_v10 }
 0x2fa   : > { %v1305_v12 = vmul.f32 1.442695, %v1300_v11 }
 0x2fb   : > { %v1295_v13 = vpop.xlane.xlu1 %1294 }
 0x2fc   : > { %3827 = vpow2.f32 %v1305_v12  ;;  %v1301_v14 = vsub.f32 %v1279_v1, %v1295_v13 }
 0x2fe   : > { %v1307_v15 = vmul.f32 1.442695, %v1301_v14 }
 0x2ff   : > { %v1298_v28 = vpop.xlane.xlu1 %1297 }
 0x300   : > { %3829 = vpow2.f32 %v1307_v15  ;;  %v1302_v29 = vsub.f32 %v1282_v4, %v1298_v28 }
 0x302   : > { %v1309_v30 = vmul.f32 1.442695, %v1302_v29 }
 0x304   : > { %3831 = vpow2.f32 %v1309_v30 }
 0x305   : > { %v3826_v16 = vpop.eup %3825 }
 0x306   : > { %v1311_v17 = vsel %vm1286_vm2, %v3826_v16, 0.0 }
 0x307   : > { %1312 = vadd.xlane.f32.xlu0 %v1311_v17 }
 0x309   : > { %v3828_v18 = vpop.eup %3827 }
 0x30a   : > { %v1314_v19 = vsel %vm1286_vm2, %v3828_v18, 0.0 }
 0x30b   : > { %1315 = vadd.xlane.f32.xlu1 %v1314_v19 }
 0x30d   : > { %v3830_v20 = vpop.eup %3829 }
 0x30e   : > { %v1317_v21 = vsel %vm1286_vm2, %v3830_v20, 0.0 }
 0x30f   : > { %1318 = vadd.xlane.f32.xlu0 %v1317_v21 }
 0x311   : > { %v3832_v31 = vpop.eup %3831 }
 0x312   : > { %v1320_v33 = vsel %vm1286_vm2, %v3832_v31, 0.0 }
 0x31c   : > { %1480 = vrot.lane.b32.xlu1 %v4593_v45, %s4231_s1 }
 0x325   : > { %1427 = vrot.lane.b32.xlu0 %v4588_v40, %s4231_s1 }
 0x340   : > { %1321 = vadd.xlane.f32.xlu1 %v1320_v33 }
 0x351   : > { %1424 = vrot.lane.b32.xlu1 %v4595_v46, %s4231_s1 }
 0x355   : > { %1477 = vrot.lane.b32.xlu1 %v4604_v50, %s4231_s1 }
 0x390   : > { %v1313_v34 = vpop.xlane.xlu0 %1312 }
 0x391   : > { %3833 = vrcp.f32 %v1313_v34 }
 0x394   : > { %v1316_v35 = vpop.xlane.xlu1 %1315 }
 0x395   : > { %3835 = vrcp.f32 %v1316_v35 }
 0x398   : > { %v1319_v36 = vpop.xlane.xlu0 %1318  ;;  %v1481_v47 = vpop.permute.xlu1 %1480 }
 0x399   : > { %3837 = vrcp.f32 %v1319_v36  ;;  %v1486_v56 = vsel %vm1191_vm1, %v1481_v47, 0 }
 0x39c   : > { %v1428_v37 = vpop.permute.xlu0 %1427 }
 0x39d   : > { %v1433_v38 = vsel %vm1191_vm1, %v1428_v37, 0 }
 0x39e   : > { %3530 = vmatpush3.bf16.xpose.msra.mxu0 %v1433_v38  ;;  %v3834_v39 = vpop.eup %3833 }
 0x39f   : > { %3541 = vmatprep.subr.bf16.mxu0 %v4229_v32  ;;  %v1327_v42 = vmul.f32 %v3834_v39, %v3826_v16 }
 0x3a2   : > { %v3836_v41 = vpop.eup %3835 }
 0x3a3   : > { %v1328_v43 = vmul.f32 %v3836_v41, %v3828_v18 }
 0x3a5   : > { %v1331_v44 = vpack.c.bf16 %v1328_v43, %v1327_v42 }
 0x3a6   : > { %v3838_v51 = vpop.eup %3837 }
 0x3a7   : > { %3520 = vmatmul.mubr.msk.bf16.vlgmr.msra.gmra.mxu1 %vm1286_vm2, %v1331_v44  ;;  %v1329_v53 = vmul.f32 %v3838_v51, %v3830_v20 }
 0x3a8   : > { %3524 = vmatpush3.bf16.msra.mxu1 %v4630_v25  ;;  %3525 = vmatprep.mubr.msk.bf16.mxu1 %vm4230_vm0, %v4229_v32 }
 0x3a9   : > { %3535 = vmatprep.subr.bf16.mxu1 %v4229_v32 }
 0x3c9   : > { %v1322_v48 = vpop.xlane.xlu1 %1321 }
 0x3ca   : > { %3839 = vrcp.f32 %v1322_v48 }
 0x3cd   : > { %v1425_v49 = vpop.permute.xlu1 %1424 }
 0x3ce   : > { %3532 = vmatmul.mubr.msk.bf16.vlgmr.msra.gmra.mxu0 %vm1191_vm1, %v1425_v49 }
 0x3cf   : > { %3543 = vmatprep.mubr.msk.bf16.mxu0 %vm4230_vm0, %v4229_v32 }
 0x3d1   : > { %v1478_v57 = vpop.permute.xlu1 %1477 }
 0x3d7   : > { %v3840_v52 = vpop.eup %3839 }
 0x3d8   : > { %v1330_v54 = vmul.f32 %v3840_v52, %v3832_v31 }
 0x3da   : > { %v1332_v55 = vpack.c.bf16 %v1330_v54, %v1329_v53  ;;  %v3777_v53 = vld [vmem:[%s4562_s9 + $0x8] sm:$0xff]  }
 0x3dc   : > { %3526 = vmatmul.mubr.msk.bf16.vlgmr.msra.gmra.mxu1 %vm1286_vm2, %v1332_v55 }
 0x3dd   : > { %3536 = vmatpush3.bf16.xpose.msra.mxu1 %v1486_v56  ;;  %3537 = vmatprep.mubr.msk.bf16.mxu1 %vm4230_vm0, %v4229_v32 }
 0x3de   : > { %3547 = vmatprep.subr.bf16.mxu1 %v4229_v32 }
 0x3e4   : > { %3538 = vmatmul.mubr.msk.bf16.vlgmr.msra.gmra.mxu1 %vm1191_vm1, %v1478_v57 }
 0x3e5   : > { %3549 = vmatprep.mubr.msk.bf16.mxu1 %vm4230_vm0, %v4229_v32 }
 0x467   : > { %v4661_v58 = vpop.f32.mrf.mxu1 }
 0x469   : > { %v3521_v59 = vpop.f32.mrf.mxu1 }
 0x46b   : > { %v4663_v60 = vpop.f32.mrf.mxu1 }
 0x46c   : > { %v1421_v61 = vpack.c.bf16 %v4663_v60, %v4661_v58  ;;  %v3779_v60 = vld [vmem:[%s4562_s9 + $0x18] sm:$0xff]  }
 0x46d   : > { %v3522_v62 = vpop.f32.mrf.mxu1 }
 0x48e   : > { %v1469_v63 = vpop.f32.mrf.mxu0 }
 0x48f   : > { %v1529_v0 = vsel %vm1286_vm2, %v1469_v63, -inf }
 0x490   : > { %1530 = vmax.xlane.f32.xlu0 %v1529_v0  ;;  %v3533_v1 = vpop.f32.mrf.mxu0 }
 0x492   : > { %v1472_v2 = vpop.f32.mrf.mxu0 }
 0x493   : > { %v1532_v3 = vsel %vm1286_vm2, %v1472_v2, -inf }
 0x494   : > { %1533 = vmax.xlane.f32.xlu1 %v1532_v3  ;;  %v3534_v4 = vpop.f32.mrf.mxu0 }
 0x49c   : > { %v4669_v5 = vpop.f32.mrf.mxu1 }
 0x49e   : > { %v3527_v6 = vpop.f32.mrf.mxu1 }
 0x4a0   : > { %v4671_v7 = vpop.f32.mrf.mxu1 }
 0x4a1   : > { %v1422_v8 = vpack.c.bf16 %v4671_v7, %v4669_v5 }
 0x4a2   : > { %v3528_v9 = vpop.f32.mrf.mxu1 }
 0x4a4   : > { %v1522_v10 = vpop.f32.mrf.mxu1 }
 0x4a5   : > { %v1535_v11 = vsel %vm1286_vm2, %v1522_v10, -inf }
 0x4a6   : > { %1536 = vmax.xlane.f32.xlu0 %v1535_v11  ;;  %v3539_v12 = vpop.f32.mrf.mxu1 }
 0x4a8   : > { %v1525_v13 = vpop.f32.mrf.mxu1 }
 0x4a9   : > { %v1538_v14 = vsel %vm1286_vm2, %v1525_v13, -inf }
 0x4aa   : > { %1539 = vmax.xlane.f32.xlu0 %v1538_v14  ;;  %v3540_v15 = vpop.f32.mrf.mxu1 }
 0x519   : > { %v1531_v16 = vpop.xlane.xlu0 %1530 }
 0x51a   : > { %v1541_v17 = vsub.f32 %v1469_v63, %v1531_v16  ;;  %v3778_v63 = vld [vmem:[%s4562_s9] sm:$0xff]  }
 0x51c   : > { %v1545_v18 = vmul.f32 1.442695, %v1541_v17 }
 0x51d   : > { %v1534_v19 = vpop.xlane.xlu1 %1533 }
 0x51e   : > { %3841 = vpow2.f32 %v1545_v18  ;;  %v1542_v20 = vsub.f32 %v1472_v2, %v1534_v19 }
 0x520   : > { %v1547_v21 = vmul.f32 1.442695, %v1542_v20 }
 0x522   : > { %3843 = vpow2.f32 %v1547_v21 }
 0x52b   : > { %v3842_v22 = vpop.eup %3841 }
 0x52c   : > { %v1553_v23 = vsel %vm1286_vm2, %v3842_v22, 0.0 }
 0x52d   : > { %1554 = vadd.xlane.f32.xlu0 %v1553_v23 }
 0x52f   : > { %v3844_v24 = vpop.eup %3843  ;;  %v1537_v26 = vpop.xlane.xlu0 %1536 }
 0x530   : > { %v1543_v28 = vsub.f32 %v1522_v10, %v1537_v26  ;;  %v1556_v29 = vsel %vm1286_vm2, %v3844_v24, 0.0 }
 0x531   : > { %1557 = vadd.xlane.f32.xlu1 %v1556_v29 }
 0x532   : > { %v1549_v30 = vmul.f32 1.442695, %v1543_v28 }
 0x533   : > { %v1540_v31 = vpop.xlane.xlu0 %1539 }
 0x534   : > { %3845 = vpow2.f32 %v1549_v30  ;;  %v1544_v33 = vsub.f32 %v1525_v13, %v1540_v31 }
 0x536   : > { %v1551_v34 = vmul.f32 1.442695, %v1544_v33 }
 0x538   : > { %3847 = vpow2.f32 %v1551_v34 }
 0x541   : > { %v3846_v35 = vpop.eup %3845 }
 0x542   : > { %v1559_v36 = vsel %vm1286_vm2, %v3846_v35, 0.0 }
 0x543   : > { %1560 = vadd.xlane.f32.xlu0 %v1559_v36 }
 0x545   : > { %v3848_v37 = vpop.eup %3847 }
 0x546   : > { %v1562_v38 = vsel %vm1286_vm2, %v3848_v37, 0.0 }
 0x547   : > { %1563 = vadd.xlane.f32.xlu1 %v1562_v38 }
 0x558   : > { %1624 = vrot.lane.b32.xlu1 %v4630_v25, %s4231_s1 }
 0x559   : > { %1576 = vrot.lane.b32.xlu0 %v4632_v27, %s4231_s1 }
 0x55c   : > { %1809 = vrot.lane.b32.xlu1 %v4588_v40, %s4232_s5 }
 0x55d   : > { %1807 = vrot.lane.b32.xlu0 %v4595_v46, %s4232_s5 }
 0x560   : > { %1860 = vrot.lane.b32.xlu1 %v4593_v45, %s4232_s5 }
 0x564   : > { %1858 = vrot.lane.b32.xlu1 %v4604_v50, %s4232_s5 }
 0x5b6   : > { %v1555_v41 = vpop.xlane.xlu0 %1554 }
 0x5ba   : > { %v1558_v39 = vpop.xlane.xlu1 %1557 }
 0x5bb   : > { %3849 = vrcp.f32 %v1558_v39 }
 0x5bc   : > { %3851 = vrcp.f32 %v1555_v41 }
 0x5c8   : > { %v3850_v42 = vpop.eup %3849 }
 0x5c9   : > { %v3852_v44 = vpop.eup %3851  ;;  %v1570_v47 = vmul.f32 %v3850_v42, %v3844_v24 }
 0x5ca   : > { %v1569_v51 = vmul.f32 %v3852_v44, %v3842_v22 }
 0x5cc   : > { %v1561_v43 = vpop.xlane.xlu0 %1560  ;;  %v1573_v52 = vpack.c.bf16 %v1570_v47, %v1569_v51 }
 0x5cd   : > { %3853 = vrcp.f32 %v1561_v43 }
 0x5d0   : > { %v1564_v48 = vpop.xlane.xlu1 %1563  ;;  %v1577_v49 = vpop.permute.xlu0 %1576 }
 0x5d1   : > { %3855 = vrcp.f32 %v1564_v48  ;;  %3542 = vmatpush3.bf16.msra.mxu0 %v1577_v49 }
 0x5d2   : > { %3553 = vmatprep.subr.bf16.mxu0 %v3779_v60 }
 0x5d4   : > { %v1625_v54 = vpop.permute.xlu1 %1624  ;;  %3544 = vmatmul.mubr.msk.bf16.vlgmr.msra.gmra.mxu0 %vm1286_vm2, %v1573_v52  ;;  %v1808_v17 = vpop.permute.xlu0 %1807 }
 0x5d5   : > { %3548 = vmatpush3.bf16.msra.mxu1 %v1625_v54  ;;  %3554 = vmatpush3.bf16.msra.mxu0 %v3779_v60 }
 0x5d6   : > { %3561 = vmatprep.subr.bf16.mxu1 %v3777_v53 }
 0x5d8   : > { %v1810_v0 = vpop.permute.xlu1 %1809 }
 0x5d9   : > { %v1815_v13 = vsel %vm1191_vm1, %v1810_v0, 0 }
 0x5da   : > { %v3854_v55 = vpop.eup %3853 }
 0x5db   : > { %v1571_v57 = vmul.f32 %v3854_v55, %v3846_v35 }
 0x5dc   : > { %v1861_v1 = vpop.permute.xlu1 %1860 }
 0x5dd   : > { %v1866_v2 = vsel %vm1191_vm1, %v1861_v1, 0 }
 0x5de   : > { %v3856_v56 = vpop.eup %3855 }
 0x5df   : > { %v1572_v59 = vmul.f32 %v3856_v56, %v3848_v37 }
 0x5e0   : > { %v1859_v58 = vpop.permute.xlu1 %1858 }
 0x5e1   : > { %v1574_v62 = vpack.c.bf16 %v1572_v59, %v1571_v57 }
 0x5e3   : > { %3550 = vmatmul.mubr.msk.bf16.vlgmr.msra.gmra.mxu1 %vm1286_vm2, %v1574_v62 }
 0x5e4   : > { %3562 = vmatpush3.bf16.msra.mxu1 %v3777_v53  ;;  %3565 = vmatprep.mubr.msk.bf16.mxu1 %vm1191_vm1, %v1421_v61  ;;  %v3780_v61 = vld [vmem:[%s4562_s9 + $0x10] sm:$0xff]  }
 0x5e5   : > { %3563 = vmatprep.subr.bf16.mxu1 %v3778_v63  ;;  %3555 = vmatprep.subr.bf16.mxu0 %v3780_v61 }
 0x5e6   : > { %3556 = vmatpush3.bf16.msra.mxu0 %v3780_v61 }
 0x5e7   : > { %3569 = vmatprep.subr.bf16.mxu0 %v4229_v32 }
 0x5e8   : > { %3564 = vmatpush3.bf16.msra.mxu1 %v3778_v63 }
 0x5e9   : > { %3575 = vmatprep.subr.bf16.mxu1 %v4229_v32 }
 0x5eb   : > { %3566 = vmatmul.mubr.msk.bf16.vlgmr.msra.gmra.mxu1 %vm1191_vm1, %v1422_v8 }
 0x5ec   : > { %3576 = vmatpush3.bf16.xpose.msra.mxu1 %v1866_v2  ;;  %3577 = vmatprep.mubr.msk.bf16.mxu1 %vm4230_vm0, %v4229_v32 }
 0x5ed   : > { %3587 = vmatprep.subr.bf16.mxu1 %v4229_v32 }
 0x5f3   : > { %3578 = vmatmul.mubr.msk.bf16.vlgmr.msra.gmra.mxu1 %vm1191_vm1, %v1859_v58 }
 0x5f4   : > { %3589 = vmatprep.mubr.msk.bf16.mxu1 %vm4230_vm0, %v4229_v32 }
 0x694   : > { %v1616_v3 = vpop.f32.mrf.mxu0 }
 0x696   : > { %v3545_v4 = vpop.f32.mrf.mxu0 }
 0x698   : > { %v1619_v5 = vpop.f32.mrf.mxu0 }
 0x699   : > { %v1671_v6 = vpack.c.bf16 %v1619_v5, %v1616_v3 }
 0x69a   : > { %v3546_v7 = vpop.f32.mrf.mxu0 }
 0x69b   : > { %3557 = vmatprep.mubr.msk.bf16.mxu0 %vm1191_vm1, %v1671_v6 }
 0x6a3   : > { %v1664_v8 = vpop.f32.mrf.mxu1 }
 0x6a5   : > { %v3551_v9 = vpop.f32.mrf.mxu1 }
 0x6a7   : > { %v1667_v10 = vpop.f32.mrf.mxu1 }
 0x6a8   : > { %v1672_v11 = vpack.c.bf16 %v1667_v10, %v1664_v8 }
 0x6a9   : > { %v3552_v12 = vpop.f32.mrf.mxu1 }
 0x6aa   : > { %3558 = vmatmul.mubr.msk.bf16.vlgmr.msra.gmra.mxu0 %vm1191_vm1, %v1672_v11 }
 0x6ab   : > { %3570 = vmatpush3.bf16.xpose.msra.mxu0 %v1815_v13  ;;  %v4719_v14 = vpop.f32.mrf.mxu1  ;;  %3571 = vmatprep.mubr.msk.bf16.mxu0 %vm4230_vm0, %v4229_v32  ;;  %v3781_v13 = vld [vmem:[%s4562_s9 + $0x28] sm:$0xff]  }
 0x6ac   : > { %3581 = vmatprep.subr.bf16.mxu0 %v4229_v32 }
 0x6ad   : > { %v4724_v15 = vpop.f32.mrf.mxu1 }
 0x6af   : > { %v4726_v16 = vpop.f32.mrf.mxu1 }
 0x6b1   : > { %v4728_v18 = vpop.f32.mrf.mxu1 }
 0x6b2   : > { %3572 = vmatmul.mubr.msk.bf16.vlgmr.msra.gmra.mxu0 %vm1191_vm1, %v1808_v17  ;;  %v3782_v17 = vld [vmem:[%s4562_s9 + $0x20] sm:$0xff]  }
 0x6b3   : > { %v1902_v19 = vpop.f32.mrf.mxu1  ;;  %3583 = vmatprep.mubr.msk.bf16.mxu0 %vm4230_vm0, %v4229_v32 }
 0x6b4   : > { %v1915_v35 = vsel %vm1286_vm2, %v1902_v19, -inf }
 0x6b5   : > { %v3579_v20 = vpop.f32.mrf.mxu1 }
 0x6b7   : > { %v1905_v21 = vpop.f32.mrf.mxu1 }
 0x6b8   : > { %v1918_v37 = vsel %vm1286_vm2, %v1905_v21, -inf }
 0x6b9   : > { %v3580_v22 = vpop.f32.mrf.mxu1 }
 0x76a   : > { %v4733_v23 = vpop.f32.mrf.mxu0 }
 0x76c   : > { %v4735_v24 = vpop.f32.mrf.mxu0 }
 0x76e   : > { %v4737_v26 = vpop.f32.mrf.mxu0 }
 0x770   : > { %v4739_v28 = vpop.f32.mrf.mxu0 }
 0x772   : > { %v1851_v29 = vpop.f32.mrf.mxu0 }
 0x773   : > { %v1909_v30 = vsel %vm1286_vm2, %v1851_v29, -inf }
 0x774   : > { %1910 = vmax.xlane.f32.xlu0 %v1909_v30  ;;  %v3573_v31 = vpop.f32.mrf.mxu0 }
 0x776   : > { %v1854_v33 = vpop.f32.mrf.mxu0 }
 0x777   : > { %v1912_v34 = vsel %vm1286_vm2, %v1854_v33, -inf }
 0x778   : > { %1913 = vmax.xlane.f32.xlu1 %v1912_v34  ;;  %v3574_v36 = vpop.f32.mrf.mxu0  ;;  %1916 = vmax.xlane.f32.xlu0 %v1915_v35 }
 0x77c   : > { %1919 = vmax.xlane.f32.xlu0 %v1918_v37 }
 0x7fd   : > { %v1911_v38 = vpop.xlane.xlu0 %1910 }
 0x7fe   : > { %v1921_v39 = vsub.f32 %v1851_v29, %v1911_v38 }
 0x800   : > { %v1925_v48 = vmul.f32 1.442695, %v1921_v39 }
 0x801   : > { %v1914_v41 = vpop.xlane.xlu1 %1913  ;;  %v1917_v42 = vpop.xlane.xlu0 %1916 }
 0x802   : > { %v1923_v43 = vsub.f32 %v1902_v19, %v1917_v42  ;;  %v1922_v44 = vsub.f32 %v1854_v33, %v1914_v41 }
 0x804   : > { %v1929_v47 = vmul.f32 1.442695, %v1923_v43  ;;  %v1927_v52 = vmul.f32 1.442695, %v1922_v44 }
 0x805   : > { %v1920_v49 = vpop.xlane.xlu0 %1919 }
 0x806   : > { %v1924_v51 = vsub.f32 %v1905_v21, %v1920_v49  ;;  %3857 = vpow2.f32 %v1929_v47 }
 0x807   : > { %3859 = vpow2.f32 %v1925_v48 }
 0x808   : > { %v1931_v53 = vmul.f32 1.442695, %v1924_v51 }
 0x80a   : > { %3861 = vpow2.f32 %v1931_v53 }
 0x80b   : > { %3863 = vpow2.f32 %v1927_v52 }
 0x813   : > { %v3858_v54 = vpop.eup %3857 }
 0x814   : > { %v1939_v55 = vsel %vm1286_vm2, %v3858_v54, 0.0  ;;  %v3860_v56 = vpop.eup %3859 }
 0x815   : > { %1940 = vadd.xlane.f32.xlu0 %v1939_v55  ;;  %v1933_v63 = vsel %vm1286_vm2, %v3860_v56, 0.0 }
 0x817   : > { %v3862_v57 = vpop.eup %3861 }
 0x818   : > { %v1942_v59 = vsel %vm1286_vm2, %v3862_v57, 0.0  ;;  %v3864_v62 = vpop.eup %3863 }
 0x819   : > { %1943 = vadd.xlane.f32.xlu1 %v1942_v59  ;;  %1934 = vadd.xlane.f32.xlu0 %v1933_v63  ;;  %v1936_v0 = vsel %vm1286_vm2, %v3864_v62, 0.0 }
 0x81d   : > { %1937 = vadd.xlane.f32.xlu1 %v1936_v0  ;;  %v1804_v0 = vadd.f32 %v4726_v16, %v4737_v26 }
 0x82e   : > { %2002 = vrot.lane.b32.xlu1 %v4630_v25, %s4232_s5 }
 0x82f   : > { %1955 = vrot.lane.b32.xlu0 %v4632_v27, %s4232_s5 }
 0x832   : > { %2124 = vrot.lane.b32.xlu1 %v4588_v40, %s4233_s8 }
 0x833   : > { %2122 = vrot.lane.b32.xlu0 %v4595_v46, %s4233_s8 }
 0x836   : > { %2175 = vrot.lane.b32.xlu1 %v4593_v45, %s4233_s8 }
 0x83a   : > { %2173 = vrot.lane.b32.xlu1 %v4604_v50, %s4233_s8 }
 0x89e   : > { %v1941_v1 = vpop.xlane.xlu0 %1940 }
 0x89f   : > { %3865 = vrcp.f32 %v1941_v1 }
 0x8a2   : > { %v1944_v2 = vpop.xlane.xlu1 %1943  ;;  %v1935_v58 = vpop.xlane.xlu0 %1934 }
 0x8a3   : > { %3867 = vrcp.f32 %v1944_v2 }
 0x8a4   : > { %3869 = vrcp.f32 %v1935_v58  ;;  %v1796_v58 = vadd.f32 %v4728_v18, %v4739_v28 }
 0x8a6   : > { %v1938_v60 = vpop.xlane.xlu1 %1937  ;;  %v1956_v61 = vpop.permute.xlu0 %1955 }
 0x8a7   : > { %3871 = vrcp.f32 %v1938_v60  ;;  %3582 = vmatpush3.bf16.msra.mxu0 %v1956_v61 }
 0x8a8   : > { %3593 = vmatprep.subr.bf16.mxu0 %v3781_v13 }
 0x8aa   : > { %v2003_v40 = vpop.permute.xlu1 %2002  ;;  %v2123_v12 = vpop.permute.xlu0 %2122 }
 0x8ab   : > { %3588 = vmatpush3.bf16.msra.mxu1 %v2003_v40 }
 0x8ac   : > { %3601 = vmatprep.subr.bf16.mxu1 %v4229_v32  ;;  %v3866_v46 = vpop.eup %3865 }
 0x8ad   : > { %v1951_v45 = vmul.f32 %v3866_v46, %v3858_v54 }
 0x8ae   : > { %v2125_v50 = vpop.permute.xlu1 %2124 }
 0x8af   : > { %v2130_v8 = vsel %vm1191_vm1, %v2125_v50, 0 }
 0x8b0   : > { %v3868_v3 = vpop.eup %3867 }
 0x8b1   : > { %v1952_v4 = vmul.f32 %v3868_v3, %v3862_v57  ;;  %v3870_v5 = vpop.eup %3869  ;;  %v1801_v57 = vadd.f32 %v4719_v14, %v4733_v23 }
 0x8b2   : > { %v1949_v9 = vmul.f32 %v3870_v5, %v3860_v56  ;;  %v2176_v34 = vpop.permute.xlu1 %2175 }
 0x8b3   : > { %v1954_v6 = vpack.c.bf16 %v1952_v4, %v1951_v45  ;;  %v2181_v41 = vsel %vm1191_vm1, %v2176_v34, 0 }
 0x8b4   : > { %v3872_v7 = vpop.eup %3871 }
 0x8b5   : > { %3590 = vmatmul.mubr.msk.bf16.vlgmr.msra.gmra.mxu1 %vm1286_vm2, %v1954_v6  ;;  %v1950_v10 = vmul.f32 %v3872_v7, %v3864_v62  ;;  %v1793_v62 = vadd.f32 %v4724_v15, %v4735_v24 }
 0x8b6   : > { %3602 = vmatpush3.bf16.xpose.msra.mxu1 %v2130_v8  ;;  %3603 = vmatprep.mubr.msk.bf16.mxu1 %vm4230_vm0, %v4229_v32  ;;  %v2174_v47 = vpop.permute.xlu1 %2173 }
 0x8b7   : > { %v1953_v11 = vpack.c.bf16 %v1950_v10, %v1949_v9  ;;  %3613 = vmatprep.subr.bf16.mxu1 %v4229_v32 }
 0x8b9   : > { %3584 = vmatmul.mubr.msk.bf16.vlgmr.msra.gmra.mxu0 %vm1286_vm2, %v1953_v11 }
 0x8ba   : > { %3594 = vmatpush3.bf16.msra.mxu0 %v3781_v13 }
 0x8bb   : > { %3595 = vmatprep.subr.bf16.mxu0 %v3782_v17 }
 0x8bd   : > { %3604 = vmatmul.mubr.msk.bf16.vlgmr.msra.gmra.mxu1 %vm1191_vm1, %v2123_v12 }
 0x8be   : > { %3615 = vmatprep.mubr.msk.bf16.mxu1 %vm4230_vm0, %v4229_v32  ;;  %3596 = vmatpush3.bf16.msra.mxu0 %v3782_v17 }
 0x8bf   : > { %3607 = vmatprep.subr.bf16.mxu0 %v4229_v32 }
 0x975   : > { %v2042_v19 = vpop.f32.mrf.mxu1 }
 0x977   : > { %v3591_v20 = vpop.f32.mrf.mxu1 }
 0x979   : > { %v1995_v21 = vpop.f32.mrf.mxu0  ;;  %v2045_v22 = vpop.f32.mrf.mxu1 }
 0x97a   : > { %v2050_v37 = vpack.c.bf16 %v2045_v22, %v2042_v19 }
 0x97b   : > { %v3585_v29 = vpop.f32.mrf.mxu0  ;;  %v3592_v30 = vpop.f32.mrf.mxu1 }
 0x97d   : > { %v1998_v31 = vpop.f32.mrf.mxu0  ;;  %v2166_v33 = vpop.f32.mrf.mxu1 }
 0x97e   : > { %v2049_v35 = vpack.c.bf16 %v1998_v31, %v1995_v21  ;;  %v2224_v36 = vsel %vm1286_vm2, %v2166_v33, -inf }
 0x97f   : > { %v3586_v38 = vpop.f32.mrf.mxu0  ;;  %2225 = vmax.xlane.f32.xlu0 %v2224_v36  ;;  %v3605_v39 = vpop.f32.mrf.mxu1  ;;  %v3784_v36 = vld [vmem:[%s4562_s9 + $0x30] sm:$0xff]  }
 0x980   : > { %3597 = vmatprep.mubr.msk.bf16.mxu0 %vm1191_vm1, %v2049_v35  ;;  %v3783_v35 = vld [vmem:[%s4562_s9 + $0x38] sm:$0xff]  }
 0x981   : > { %3598 = vmatmul.mubr.msk.bf16.vlgmr.msra.gmra.mxu0 %vm1191_vm1, %v2050_v37  ;;  %v2169_v42 = vpop.f32.mrf.mxu1 }
 0x982   : > { %3608 = vmatpush3.bf16.xpose.msra.mxu0 %v2181_v41  ;;  %v2227_v43 = vsel %vm1286_vm2, %v2169_v42, -inf  ;;  %3609 = vmatprep.mubr.msk.bf16.mxu0 %vm4230_vm0, %v4229_v32 }
 0x983   : > { %2228 = vmax.xlane.f32.xlu1 %v2227_v43  ;;  %v3606_v44 = vpop.f32.mrf.mxu1  ;;  %3619 = vmatprep.subr.bf16.mxu0 %v4229_v32 }
 0x989   : > { %3610 = vmatmul.mubr.msk.bf16.vlgmr.msra.gmra.mxu0 %vm1191_vm1, %v2174_v47 }
 0x98a   : > { %3621 = vmatprep.mubr.msk.bf16.mxu0 %vm4230_vm0, %v4229_v32 }
 0xa08   : > { %v2226_v54 = vpop.xlane.xlu0 %2225 }
 0xa09   : > { %v2236_v55 = vsub.f32 %v2166_v33, %v2226_v54 }
 0xa0b   : > { %v2240_v56 = vmul.f32 1.442695, %v2236_v55 }
 0xa0c   : > { %v2229_v48 = vpop.xlane.xlu1 %2228 }
 0xa0d   : > { %v2237_v49 = vsub.f32 %v2169_v42, %v2229_v48 }
 0xa0f   : > { %v2242_v51 = vmul.f32 1.442695, %v2237_v49 }
 0xa11   : > { %3873 = vpow2.f32 %v2242_v51 }
 0xa12   : > { %3875 = vpow2.f32 %v2240_v56  ;;  %v3905_v56 = vld [vmem:[#allocation2 + $0x10] sm:$0xff] }
 0xa1e   : > { %v3874_v52 = vpop.eup %3873 }
 0xa1f   : > { %v2251_v53 = vsel %vm1286_vm2, %v3874_v52, 0.0  ;;  %v3876_v16 = vpop.eup %3875 }
 0xa20   : > { %2252 = vadd.xlane.f32.xlu1 %v2251_v53  ;;  %v2248_v3 = vsel %vm1286_vm2, %v3876_v16, 0.0 }
 0xa41   : > { %v3599_v59 = vpop.f32.mrf.mxu0 }
 0xa42   : > { %v4790_v32 = vadd.f32 %v3599_v59, %v1801_v57 }
 0xa43   : > { %v2103_v63 = vpop.f32.mrf.mxu0 }
 0xa44   : > { %v4794_v1 = vadd.f32 %v2103_v63, %v1793_v62 }
 0xa45   : > { %v3600_v2 = vpop.f32.mrf.mxu0 }
 0xa46   : > { %v4798_v60 = vadd.f32 %v3600_v2, %v1804_v0  ;;  %v3906_v0 = vld [vmem:[#allocation2] sm:$0xff] }
 0xa47   : > { %v2106_v14 = vpop.f32.mrf.mxu0 }
 0xa48   : > { %v4800_v23 = vadd.f32 %v2106_v14, %v1796_v58  ;;  %v3907_v58 = vld [vmem:[#allocation2 + $0x8] sm:$0xff] }
 0xa49   : > { %v2217_v61 = vpop.f32.mrf.mxu0 }
 0xa4a   : > { %v2230_v15 = vsel %vm1286_vm2, %v2217_v61, -inf }
 0xa4b   : > { %v3611_v24 = vpop.f32.mrf.mxu0  ;;  %2231 = vmax.xlane.f32.xlu0 %v2230_v15  ;;  %v3787_v15 = vld [vmem:[%s4564_s21 + $0x74] ss:$8 sps:$4 sm:$0xff]  }
 0xa4d   : > { %v2220_v40 = vpop.f32.mrf.mxu0 }
 0xa4e   : > { %v2233_v46 = vsel %vm1286_vm2, %v2220_v40, -inf }
 0xa4f   : > { %v3612_v26 = vpop.f32.mrf.mxu0  ;;  %2234 = vmax.xlane.f32.xlu0 %v2233_v46 }
 0xa53   : > { %2249 = vadd.xlane.f32.xlu0 %v2248_v3 }
 0xaa9   : > { %v2253_v11 = vpop.xlane.xlu1 %2252 }
 0xad4   : > { %v2232_v18 = vpop.xlane.xlu0 %2231 }
 0xad5   : > { %v2238_v28 = vsub.f32 %v2217_v61, %v2232_v18 }
 0xad7   : > { %v2244_v45 = vmul.f32 1.442695, %v2238_v28 }
 0xad8   : > { %v2235_v4 = vpop.xlane.xlu0 %2234 }
 0xad9   : > { %3877 = vpow2.f32 %v2244_v45  ;;  %v2239_v5 = vsub.f32 %v2220_v40, %v2235_v4 }
 0xadb   : > { %v2246_v50 = vmul.f32 1.442695, %v2239_v5 }
 0xadc   : > { %v2250_v10 = vpop.xlane.xlu0 %2249 }
 0xadd   : > { %3879 = vpow2.f32 %v2246_v50 }
 0xade   : > { %3881 = vrcp.f32 %v2250_v10  ;;  %v3793_v10 = vld [vmem:[%s4564_s21 + $0x54] ss:$8 sps:$4 sm:$0xff]  }
 0xadf   : > { %3883 = vrcp.f32 %v2253_v11  ;;  %v3791_v11 = vld [vmem:[%s4564_s21 + $0x50] ss:$8 sps:$4 sm:$0xff]  }
 0xae6   : > { %v3878_v6 = vpop.eup %3877 }
 0xae7   : > { %v2254_v7 = vsel %vm1286_vm2, %v3878_v6, 0.0 }
 0xae8   : > { %2255 = vadd.xlane.f32.xlu0 %v2254_v7 }
 0xaea   : > { %v3880_v8 = vpop.eup %3879 }
 0xaeb   : > { %v2257_v9 = vsel %vm1286_vm2, %v3880_v8, 0.0  ;;  %v3882_v12 = vpop.eup %3881 }
 0xaec   : > { %2258 = vadd.xlane.f32.xlu1 %v2257_v9  ;;  %v3884_v17 = vpop.eup %3883  ;;  %v2264_v19 = vmul.f32 %v3882_v12, %v3876_v16  ;;  %v3788_v9 = vld [vmem:[%s4564_s21 + $0x60] ss:$8 sps:$4 sm:$0xff]   ;;  %v3796_v12 = vld [vmem:[%s4564_s21 + $0x44] ss:$8 sps:$4 sm:$0xff]  }
 0xaed   : > { %v2265_v22 = vmul.f32 %v3884_v17, %v3874_v52  ;;  %v3797_v17 = vld [vmem:[%s4564_s21 + $0x30] ss:$8 sps:$4 sm:$0xff]  }
 0xafd   : > { %2317 = vrot.lane.b32.xlu1 %v4630_v25, %s4233_s8  ;;  %v2268_v25 = vpack.c.bf16 %v2265_v22, %v2264_v19  ;;  %v3799_v19 = vld [vmem:[%s4564_s21 + $0x34] ss:$8 sps:$4 sm:$0xff]   ;;  %v4234_v22 = vmov 0  }
 0xafe   : > { %2270 = vrot.lane.b32.xlu0 %v4632_v27, %s4233_s8 }
 0xb71   : > { %v2256_v13 = vpop.xlane.xlu0 %2255 }
 0xb72   : > { %3885 = vrcp.f32 %v2256_v13  ;;  %v3794_v13 = vld [vmem:[%s4564_s21 + $0x40] ss:$8 sps:$4 sm:$0xff]  }
 0xb75   : > { %v2271_v20 = vpop.permute.xlu0 %2270  ;;  %v2259_v21 = vpop.xlane.xlu1 %2258 }
 0xb76   : > { %3887 = vrcp.f32 %v2259_v21  ;;  %3614 = vmatpush3.bf16.msra.mxu1 %v2271_v20  ;;  %v3802_v20 = vld [vmem:[%s4564_s21 + $0x24] ss:$8 sps:$4 sm:$0xff]   ;;  %v3800_v21 = vld [vmem:[%s4564_s21 + $0x20] ss:$8 sps:$4 sm:$0xff]  }
 0xb77   : > { %3625 = vmatprep.subr.bf16.mxu1 %v3783_v35 }
 0xb79   : > { %3616 = vmatmul.mubr.msk.bf16.vlgmr.msra.gmra.mxu1 %vm1286_vm2, %v2268_v25  ;;  %v2318_v27 = vpop.permute.xlu1 %2317  ;;  %v3805_v25 = vld [vmem:[%s4564_s21 + $0x14] ss:$8 sps:$4 sm:$0xff]  }
 0xb7a   : > { %3620 = vmatpush3.bf16.msra.mxu0 %v2318_v27  ;;  %3626 = vmatpush3.bf16.msra.mxu1 %v3783_v35  ;;  %v3803_v27 = vld [vmem:[%s4564_s21 + $0x10] ss:$8 sps:$4 sm:$0xff]  }
 0xb7b   : > { %3627 = vmatprep.subr.bf16.mxu1 %v3784_v36  ;;  %2618 = vmatprep.subr.bf16.mxu0 %v3787_v15  ;;  %v3812_v35 = vld [vmem:[%s4566_s18 + $0x30] sm:$0xff]  }
 0xb7e   : > { %3628 = vmatpush3.bf16.msra.mxu1 %v3784_v36  ;;  %v3813_v36 = vld [vmem:[%s4566_s18 + $0x68] sm:$0xff]  }
 0xb7f   : > { %v3886_v29 = vpop.eup %3885 }
 0xb80   : > { %v2266_v31 = vmul.f32 %v3886_v29, %v3878_v6  ;;  %v3808_v29 = vld [vmem:[%s4564_s21 + $0x4] ss:$8 sps:$4 sm:$0xff]  }
 0xb83   : > { %v3888_v30 = vpop.eup %3887 }
 0xb84   : > { %v2267_v33 = vmul.f32 %v3888_v30, %v3880_v8  ;;  %v3790_v8 = vld [vmem:[%s4564_s21 + $0x64] ss:$8 sps:$4 sm:$0xff]   ;;  %v3806_v30 = vld [vmem:[%s4564_s21] ss:$8 sps:$4 sm:$0xff]  }
 0xb86   : > { %v2269_v34 = vpack.c.bf16 %v2267_v33, %v2266_v31  ;;  %v3809_v31 = vld [vmem:[%s4566_s18 + $0x78] sm:$0xff]  }
 0xb87   : > { %v3810_v33 = vld [vmem:[%s4566_s18 + $0x38] sm:$0xff]   ;;  %3417 = vmatprep.subr.bf16.mxu1 %v3809_v31 }
 0xb88   : > { %3622 = vmatmul.mubr.msk.bf16.vlgmr.msra.gmra.mxu0 %vm1286_vm2, %v2269_v34  ;;  %v3811_v34 = vld [vmem:[%s4566_s18 + $0x70] sm:$0xff]  }
 0xb89   : > { %2650 = vmatprep.mubr.bf16.mxu0 %v4234_v22 }
 0xc39   : > { %v2310_v37 = vpop.f32.mrf.mxu1 }
 0xc3b   : > { %v3617_v38 = vpop.f32.mrf.mxu1 }
 0xc3c   : > { %v3815_v38 = vld [vmem:[%s4566_s18 + $0x60] sm:$0xff]  }
 0xc3d   : > { %v2313_v39 = vpop.f32.mrf.mxu1 }
 0xc3e   : > { %v2364_v41 = vpack.c.bf16 %v2313_v39, %v2310_v37  ;;  %v3814_v37 = vld [vmem:[%s4566_s18 + $0x28] sm:$0xff]   ;;  %v3816_v39 = vld [vmem:[%s4566_s18 + $0x20] sm:$0xff]  }
 0xc3f   : > { %v3618_v42 = vpop.f32.mrf.mxu1 }
 0xc40   : > { %3629 = vmatprep.mubr.msk.bf16.mxu1 %vm1191_vm1, %v2364_v41  ;;  %v3817_v41 = vld [vmem:[%s4566_s18 + $0x58] sm:$0xff]  }
 0xc41   : > { %v3818_v42 = vld [vmem:[%s4566_s18 + $0x18] sm:$0xff]  }
 0xc48   : > { %v2357_v43 = vpop.f32.mrf.mxu0 }
 0xc4a   : > { %v3623_v44 = vpop.f32.mrf.mxu0 }
 0xc4c   : > { %v2360_v47 = vpop.f32.mrf.mxu0 }
 0xc4d   : > { %v2365_v48 = vpack.c.bf16 %v2360_v47, %v2357_v43 }
 0xc4e   : > { %v3624_v49 = vpop.f32.mrf.mxu0 }
 0xc4f   : > { %3630 = vmatmul.mubr.msk.bf16.vlgmr.msra.gmra.mxu1 %vm1191_vm1, %v2365_v48 }
 0xc50   : > { %3418 = vmatpush3.bf16.msra.mxu1 %v3810_v33 }
 0xc51   : > { %3419 = vmatprep.subr.bf16.mxu1 %v3811_v34 }
 0xc54   : > { %3420 = vmatpush3.bf16.msra.mxu1 %v3812_v35 }
 0xc55   : > { %3421 = vmatprep.subr.bf16.mxu1 %v3813_v36 }
 0xc58   : > { %3422 = vmatpush3.bf16.msra.mxu1 %v3814_v37 }
 0xc59   : > { %3423 = vmatprep.subr.bf16.mxu1 %v3815_v38 }
 0xc5c   : > { %3424 = vmatpush3.bf16.msra.mxu1 %v3816_v39 }
 0xc5d   : > { %3425 = vmatprep.subr.bf16.mxu1 %v3817_v41 }
 0xc60   : > { %3426 = vmatpush3.bf16.msra.mxu1 %v3818_v42 }
 0xd0f   : > { %v3631_v51 = vpop.f32.mrf.mxu1 }
 0xd10   : > { %v2435_v63 = vadd.f32 %v3631_v51, %v4790_v32 }
 0xd11   : > { %v2418_v52 = vpop.f32.mrf.mxu1 }
 0xd12   : > { %v2433_v53 = vadd.f32 %v2418_v52, %v4794_v1  ;;  %v3908_v1 = vld [vmem:[#allocation2 + $0x18] sm:$0xff] }
 0xd13   : > { %v3632_v54 = vpop.f32.mrf.mxu1  ;;  %v2439_v61 = vadd.f32 %v3908_v1, %v2435_v63  ;;  %v3291_v63 = vld [vmem:[%s790_s16] ss:$0 sm:$0xff]  ;;  %s5022_s16 = scalar_lea.vmem %s5021_s14, %s4530_s2 }
 0xd14   : > { %v2436_v55 = vadd.f32 %v3632_v54, %v4798_v60  ;;  %v2437_v57 = vadd.f32 %v3905_v56, %v2433_v53  ;;  %v3785_v60 = vld [vmem:[%s4564_s21 + $0x70] ss:$8 sps:$4 sm:$0xff]  }
 0xd15   : > { %v2421_v59 = vpop.f32.mrf.mxu1  ;;  %2619 = vmatpush1.bf16.msra.mxu0 %v3785_v60 }
 0xd16   : > { %v2434_v62 = vadd.f32 %v2421_v59, %v4800_v23  ;;  %2441 = vadd.xlane.f32.xlu1 %v2437_v57  ;;  %v2440_v14 = vadd.f32 %v3907_v58, %v2436_v55  ;;  %2620 = vmatprep.subr.bf16.mxu0 %v3790_v8 }
 0xd18   : > { %v2438_v2 = vadd.f32 %v3906_v0, %v2434_v62 }
 0xd19   : > { %2621 = vmatpush1.bf16.msra.mxu0 %v3788_v9 }
 0xd1a   : > { %2443 = vadd.xlane.f32.xlu0 %v2438_v2  ;;  %2447 = vadd.xlane.f32.xlu1 %v2440_v14 }
 0xd1b   : > { %2622 = vmatprep.subr.bf16.mxu0 %v3793_v10 }
 0xd1d   : > { %2623 = vmatpush1.bf16.msra.mxu0 %v3791_v11  ;;  %v2526_v11 = vld [vmem:[%s4540_s4] sm:$0x3] }
 0xd1e   : > { %2445 = vadd.xlane.f32.xlu0 %v2439_v61  ;;  %2624 = vmatprep.subr.bf16.mxu0 %v3796_v12 }
 0xd21   : > { %2625 = vmatpush1.bf16.msra.mxu0 %v3794_v13 }
 0xd22   : > { %2626 = vmatprep.subr.bf16.mxu0 %v3799_v19 }
 0xd25   : > { %2627 = vmatpush1.bf16.msra.mxu0 %v3797_v17 }
 0xd26   : > { %2628 = vmatprep.subr.bf16.mxu0 %v3802_v20 }
 0xd29   : > { %2629 = vmatpush1.bf16.msra.mxu0 %v3800_v21 }
 0xd2a   : > { %2630 = vmatprep.subr.bf16.mxu0 %v3805_v25 }
 0xd2d   : > { %2631 = vmatpush1.bf16.msra.mxu0 %v3803_v27 }
 0xd2e   : > { %2632 = vmatprep.subr.bf16.mxu0 %v3808_v29 }
 0xd31   : > { %2633 = vmatpush1.bf16.msra.mxu0 %v3806_v30 }
 0xd9f   : > { %v2442_v24 = vpop.xlane.xlu1 %2441 }
 0xda0   : > { %v2450_v40 = vmul.f32 0.0078125, %v2442_v24 }
 0xda2   : > { %v4823_v46 = vsub.f32 %v2437_v57, %v2450_v40 }
 0xda3   : > { %v2444_v23 = vpop.xlane.xlu0 %2443  ;;  %v2448_v16 = vpop.xlane.xlu1 %2447 }
 0xda4   : > { %v2451_v32 = vmul.f32 0.0078125, %v2444_v23  ;;  %v2453_v26 = vmul.f32 0.0078125, %v2448_v16  ;;  %v2458_v3 = vmul.f32 %v4823_v46, %v4823_v46 }
 0xda6   : > { %v4827_v18 = vsub.f32 %v2438_v2, %v2451_v32  ;;  %2462 = vadd.xlane.f32.xlu0 %v2458_v3  ;;  %v4829_v45 = vsub.f32 %v2440_v14, %v2453_v26  ;;  %v3292_v14 = vld [vmem:[%s793_s0] ss:$0 sm:$0xff] }
 0xda7   : > { %v2446_v28 = vpop.xlane.xlu0 %2445 }
 0xda8   : > { %v2452_v4 = vmul.f32 0.0078125, %v2446_v28  ;;  %v2459_v5 = vmul.f32 %v4827_v18, %v4827_v18  ;;  %v2461_v7 = vmul.f32 %v4829_v45, %v4829_v45  ;;  %v3819_v28 = vld [vmem:[%s4566_s18 + $0x50] sm:$0xff]  }
 0xda9   : > { %3427 = vmatprep.subr.bf16.mxu1 %v3819_v28 }
 0xdaa   : > { %v4833_v50 = vsub.f32 %v2439_v61, %v2452_v4  ;;  %2464 = vadd.xlane.f32.xlu1 %v2459_v5  ;;  %v3821_v4 = vld [vmem:[%s4566_s18 + $0x48] sm:$0xff]  }
 0xdab   : > { %v3822_v5 = vld [vmem:[%s4566_s18 + $0x8] sm:$0xff]  }
 0xdac   : > { %v2460_v6 = vmul.f32 %v4833_v50, %v4833_v50 }
 0xdae   : > { %2466 = vadd.xlane.f32.xlu0 %v2460_v6  ;;  %2468 = vadd.xlane.f32.xlu1 %v2461_v7  ;;  %v3824_v6 = vld [vmem:[%s4566_s18] sm:$0xff]   ;;  %v2528_v7 = vlaneseq }
 0xdb0   : > { %v2529_v8 = vshrl.u32 %v2528_v7, 7 }
 0xdb2   : > { %v2534_v9 = vsub.s32 1, %v2529_v8  ;;  %v2530_v10 = vsub.s32 0, %v2529_v8 }
 0xdb4   : > { %v2535_v13 = vrot.slane %v2526_v11, %v2534_v9  ;;  %v2531_v17 = vrot.slane %v2526_v11, %v2530_v10 }
 0xe2f   : > { %v2463_v43 = vpop.xlane.xlu0 %2462 }
 0xe30   : > { %v2470_v44 = vmul.f32 0.0078125, %v2463_v43 }
 0xe32   : > { %v2474_v47 = vadd.f32 1e-05, %v2470_v44 }
 0xe33   : > { %v2465_v48 = vpop.xlane.xlu1 %2464 }
 0xe34   : > { %3889 = vrsqrt.f32 %v2474_v47  ;;  %v2471_v49 = vmul.f32 0.0078125, %v2465_v48 }
 0xe36   : > { %v2475_v51 = vadd.f32 1e-05, %v2471_v49 }
 0xe37   : > { %v2467_v52 = vpop.xlane.xlu0 %2466  ;;  %v2469_v53 = vpop.xlane.xlu1 %2468 }
 0xe38   : > { %3891 = vrsqrt.f32 %v2475_v51  ;;  %v2472_v54 = vmul.f32 0.0078125, %v2467_v52  ;;  %v2473_v55 = vmul.f32 0.0078125, %v2469_v53 }
 0xe3a   : > { %v2476_v56 = vadd.f32 1e-05, %v2472_v54  ;;  %v2477_v57 = vadd.f32 1e-05, %v2473_v55 }
 0xe3c   : > { %3893 = vrsqrt.f32 %v2476_v56  ;;  %v3309_v56 = vld [vmem:[%s5022_s16] ss:$0 sm:$0xff] }
 0xe3d   : > { %3895 = vrsqrt.f32 %v2477_v57 }
 0xe41   : > { %v3890_v59 = vpop.eup %3889 }
 0xe42   : > { %v2482_v62 = vmul.f32 %v3890_v59, %v4823_v46 }
 0xe44   : > { %v2493_v58 = vmul.f32 %v3291_v63, %v2482_v62 }
 0xe45   : > { %v3892_v0 = vpop.eup %3891 }
 0xe46   : > { %v2483_v2 = vmul.f32 %v3892_v0, %v4827_v18  ;;  %v4876_v15 = vadd.f32 %v3292_v14, %v2493_v58 }
 0xe48   : > { %v2494_v1 = vmul.f32 %v3291_v63, %v2483_v2 }
 0xe49   : > { %v3894_v61 = vpop.eup %3893 }
 0xe4a   : > { %v3896_v60 = vpop.eup %3895  ;;  %v4878_v24 = vadd.f32 %v3292_v14, %v2494_v1  ;;  %v2484_v40 = vmul.f32 %v3894_v61, %v4833_v50  ;;  %v3823_v50 = vld [vmem:[%s4566_s18 + $0x40] sm:$0xff]  }
 0xe4b   : > { %v2485_v46 = vmul.f32 %v3896_v60, %v4829_v45  ;;  %v3820_v45 = vld [vmem:[%s4566_s18 + $0x10] sm:$0xff]  }
 0xe4c   : > { %v2508_v23 = vpack.c.bf16 %v4878_v24, %v4876_v15  ;;  %v2495_v16 = vmul.f32 %v3291_v63, %v2484_v40  ;;  %3428 = vmatpush3.bf16.msra.mxu1 %v3820_v45 }
 0xe4d   : > { %v2496_v32 = vmul.f32 %v3291_v63, %v2485_v46  ;;  %3429 = vmatprep.subr.bf16.mxu1 %v3821_v4 }
 0xe4e   : > { %2651 = vmatmul.mubr.bf16.vlgmr.msra.gmra.mxu0 %v2508_v23  ;;  %v4885_v26 = vadd.f32 %v3292_v14, %v2495_v16 }
 0xe4f   : > { %2660 = vmatprep.mubr.bf16.mxu0 %v4234_v22  ;;  %v4887_v3 = vadd.f32 %v3292_v14, %v2496_v32 }
 0xe50   : > { %3430 = vmatpush3.bf16.msra.mxu1 %v3822_v5 }
 0xe51   : > { %v2509_v18 = vpack.c.bf16 %v4887_v3, %v4885_v26  ;;  %3431 = vmatprep.subr.bf16.mxu1 %v3823_v50 }
 0xe54   : > { %3432 = vmatpush3.bf16.msra.mxu1 %v3824_v6 }
 0xe56   : > { %2661 = vmatmul.mubr.bf16.gmra.mxu0 %v2509_v18 }
 0xf0e   : > { %v2652_v12 = vpop.f32.mrf.mxu0 }
 0xf0f   : > { %v2653_v25 = vadd.f32 %v2652_v12, %v2531_v17 }
 0xf10   : > { %v2654_v19 = vpop.f32.mrf.mxu0 }
 0xf11   : > { %v2655_v21 = vadd.f32 %v2654_v19, %v2535_v13  ;;  %v2671_v35 = vmax.f32 %v2653_v25, 0.0 }
 0xf12   : > { %v2656_v20 = vpop.f32.mrf.mxu0 }
 0xf13   : > { %v2657_v22 = vadd.f32 %v2656_v20, %v2531_v17  ;;  %v2672_v33 = vmax.f32 %v2655_v21, 0.0 }
 0xf14   : > { %v2658_v27 = vpop.f32.mrf.mxu0 }
 0xf15   : > { %v2659_v29 = vadd.f32 %v2658_v27, %v2535_v13  ;;  %v2673_v30 = vmax.f32 %v2657_v22, 0.0 }
 0xf16   : > { %v2662_v31 = vpop.f32.mrf.mxu0 }
 0xf17   : > { %v2674_v34 = vmax.f32 %v2659_v29, 0.0  ;;  %v2679_v38 = vpack.c.bf16 %v2673_v30, %v2671_v35  ;;  %v2663_v43 = vadd.f32 %v2662_v31, %v2531_v17 }
 0xf18   : > { %v2664_v36 = vpop.f32.mrf.mxu0 }
 0xf19   : > { %v2680_v37 = vpack.c.bf16 %v2674_v34, %v2672_v33  ;;  %v2665_v41 = vadd.f32 %v2664_v36, %v2535_v13  ;;  %v2675_v52 = vmax.f32 %v2663_v43, 0.0 }
 0xf1a   : > { %v2666_v39 = vpop.f32.mrf.mxu0 }
 0xf1b   : > { %v2667_v42 = vadd.f32 %v2666_v39, %v2531_v17  ;;  %2850 = vmatprep.mubr.bf16.mxu1 %v2680_v37  ;;  %v2676_v49 = vmax.f32 %v2665_v41, 0.0  ;;  %v3326_v37 = vld [vmem:[%s796_s6] ss:$0 sm:$0xff]  ;;  %s5025_s6 = sld [smem:[#allocation19_spill]] }
 0xf1c   : > { %v2668_v44 = vpop.f32.mrf.mxu0  ;;  %2851 = vmatmul.mubr.bf16.vlgmr.msra.gmra.mxu1 %v2679_v38  ;;  %v3327_v39 = vld [vmem:[%s799_s23] ss:$0 sm:$0xff] }
 0xf1d   : > { %v2669_v47 = vadd.f32 %v2668_v44, %v2535_v13  ;;  %v2677_v48 = vmax.f32 %v2667_v42, 0.0 }
 0xf1f   : > { %v2678_v51 = vmax.f32 %v2669_v47, 0.0  ;;  %v2681_v54 = vpack.c.bf16 %v2677_v48, %v2675_v52 }
 0xf21   : > { %v2682_v53 = vpack.c.bf16 %v2678_v51, %v2676_v49  ;;  %p3328_p12 = scmp.ne.s32.totalorder %s5025_s6, 1 }
 0xf23   : > { %2858 = vmatprep.mubr.bf16.mxu1 %v2682_v53 }
 0xf24   : > { %2859 = vmatmul.mubr.bf16.gmra.mxu1 %v2681_v54 }
 0xfdc   : > { %v3433_v55 = vpop.f32.mrf.mxu1 }
 0xfde   : > { %v3434_v57 = vpop.f32.mrf.mxu1 }
 0xfdf   : > { %v3435_v59 = vadd.f32 %v3434_v57, %v3433_v55 }
 0xfe0   : > { %v3436_v62 = vpop.f32.mrf.mxu1 }
 0xfe1   : > { %v2853_v63 = vadd.f32 %v3435_v59, %v3309_v56 }
 0xfe2   : > { %v3437_v0 = vpop.f32.mrf.mxu1 }
 0xfe3   : > { %v3438_v2 = vadd.f32 %v3437_v0, %v3436_v62  ;;  %v2867_v58 = vadd.f32 %v2853_v63, %v4876_v15 }
 0xfe4   : > { %v3439_v14 = vpop.f32.mrf.mxu1 }
 0xfe5   : > { %v2856_v1 = vadd.f32 %v3438_v2, %v3309_v56  ;;  %2871 = vadd.xlane.f32.xlu0 %v2867_v58 }
 0xfe6   : > { %v3440_v61 = vpop.f32.mrf.mxu1 }
 0xfe7   : > { %v3441_v60 = vadd.f32 %v3440_v61, %v3439_v14  ;;  %v2868_v40 = vadd.f32 %v2856_v1, %v4878_v24 }
 0xfe8   : > { %v3442_v46 = vpop.f32.mrf.mxu1 }
 0xfe9   : > { %v2861_v23 = vadd.f32 %v3441_v60, %v3309_v56  ;;  %2873 = vadd.xlane.f32.xlu1 %v2868_v40 }
 0xfea   : > { %v3443_v16 = vpop.f32.mrf.mxu1 }
 0xfeb   : > { %v3444_v32 = vadd.f32 %v3443_v16, %v3442_v46  ;;  %v2869_v18 = vadd.f32 %v2861_v23, %v4885_v26 }
 0xfed   : > { %v2864_v28 = vadd.f32 %v3444_v32, %v3309_v56  ;;  %2875 = vadd.xlane.f32.xlu0 %v2869_v18 }
 0xfef   : > { %v2870_v45 = vadd.f32 %v2864_v28, %v4887_v3 }
 0xff1   : > { %2877 = vadd.xlane.f32.xlu1 %v2870_v45 }
0x106e   : > { %v2872_v15 = vpop.xlane.xlu0 %2871 }
0x106f   : > { %v2879_v4 = vmul.f32 0.0078125, %v2872_v15 }
0x1071   : > { %v2883_v5 = vsub.f32 %v2867_v58, %v2879_v4 }
0x1072   : > { %v2874_v50 = vpop.xlane.xlu1 %2873 }
0x1073   : > { %v2880_v6 = vmul.f32 0.0078125, %v2874_v50  ;;  %v2887_v7 = vmul.f32 %v2883_v5, %v2883_v5 }
0x1075   : > { %v2884_v8 = vsub.f32 %v2868_v40, %v2880_v6  ;;  %2891 = vadd.xlane.f32.xlu0 %v2887_v7 }
0x1076   : > { %v2876_v24 = vpop.xlane.xlu0 %2875 }
0x1077   : > { %v2881_v9 = vmul.f32 0.0078125, %v2876_v24  ;;  %v2888_v10 = vmul.f32 %v2884_v8, %v2884_v8 }
0x1079   : > { %v2885_v11 = vsub.f32 %v2869_v18, %v2881_v9  ;;  %2893 = vadd.xlane.f32.xlu1 %v2888_v10 }
0x107a   : > { %v2878_v12 = vpop.xlane.xlu1 %2877 }
0x107b   : > { %v2882_v26 = vmul.f32 0.0078125, %v2878_v12  ;;  %v2889_v13 = vmul.f32 %v2885_v11, %v2885_v11 }
0x107d   : > { %v2886_v17 = vsub.f32 %v2870_v45, %v2882_v26  ;;  %2895 = vadd.xlane.f32.xlu0 %v2889_v13 }
0x107f   : > { %v2890_v3 = vmul.f32 %v2886_v17, %v2886_v17 }
0x1081   : > { %2897 = vadd.xlane.f32.xlu1 %v2890_v3 }
0x10fe   : > { %v2892_v19 = vpop.xlane.xlu0 %2891 }
0x10ff   : > { %v2899_v20 = vmul.f32 0.0078125, %v2892_v19 }
0x1101   : > { %v2903_v21 = vadd.f32 1e-05, %v2899_v20 }
0x1102   : > { %v2894_v22 = vpop.xlane.xlu1 %2893 }
0x1103   : > { %3897 = vrsqrt.f32 %v2903_v21  ;;  %v2900_v25 = vmul.f32 0.0078125, %v2894_v22 }
0x1105   : > { %v2904_v27 = vadd.f32 1e-05, %v2900_v25 }
0x1106   : > { %v2896_v29 = vpop.xlane.xlu0 %2895 }
0x1107   : > { %3899 = vrsqrt.f32 %v2904_v27  ;;  %v2901_v30 = vmul.f32 0.0078125, %v2896_v29 }
0x1109   : > { %v2905_v31 = vadd.f32 1e-05, %v2901_v30 }
0x110a   : > { %v2898_v33 = vpop.xlane.xlu1 %2897 }
0x110b   : > { %3901 = vrsqrt.f32 %v2905_v31  ;;  %v2902_v34 = vmul.f32 0.0078125, %v2898_v33 }
0x110d   : > { %v2906_v35 = vadd.f32 1e-05, %v2902_v34 }
0x110f   : > { %3903 = vrsqrt.f32 %v2906_v35 }
0x1110   : > { %v3898_v36 = vpop.eup %3897 }
0x1111   : > { %v2911_v38 = vmul.f32 %v3898_v36, %v2883_v5 }
0x1113   : > { %v2922_v41 = vmul.f32 %v3326_v37, %v2911_v38 }
0x1114   : > { %v3900_v42 = vpop.eup %3899 }
0x1115   : > { %v2933_v43 = vadd.f32 %v3327_v39, %v2922_v41  ;;  %v2912_v44 = vmul.f32 %v3900_v42, %v2884_v8 }
0x1117   : > { %2937 = vst [vmem:[#allocation2 + $0x10] sm:$0xff] %v2933_v43  ;;  %v2923_v47 = vmul.f32 %v3326_v37, %v2912_v44 }
0x1118   : > { %v3902_v48 = vpop.eup %3901 }
0x1119   : > { %v2934_v49 = vadd.f32 %v3327_v39, %v2923_v47  ;;  %v2913_v51 = vmul.f32 %v3902_v48, %v2885_v11 }
0x111b   : > { %2938 = vst [vmem:[#allocation2] sm:$0xff] %v2934_v49  ;;  %v2924_v52 = vmul.f32 %v3326_v37, %v2913_v51 }
0x111c   : > { %v3904_v53 = vpop.eup %3903 }
0x111d   : > { %v2935_v54 = vadd.f32 %v3327_v39, %v2924_v52  ;;  %v2914_v55 = vmul.f32 %v3904_v53, %v2886_v17 }
0x111f   : > { %2939 = vst [vmem:[#allocation2 + $0x18] sm:$0xff] %v2935_v54  ;;  %v2925_v56 = vmul.f32 %v3326_v37, %v2914_v55  ;;  %2944 = sbr.rel (%p3328_p12) target bundleno = 4390 (0x1126), region = 116 }
0x1121   : > { %v2936_v57 = vadd.f32 %v3327_v39, %v2925_v56 }
0x1123   : > { %2940 = vst [vmem:[#allocation2 + $0x8] sm:$0xff] %v2936_v57 }
0x1124   : > { %2945 = vst [vmem:[#allocation14] sm:$0xff] %v2933_v43  ;;  %2946 = vst [vmem:[#allocation14 + $0x8] sm:$0xff] %v2934_v49 }
0x1125   : > { %2947 = vst [vmem:[#allocation14 + $0x10] sm:$0xff] %v2935_v54  ;;  %2948 = vst [vmem:[#allocation14 + $0x18] sm:$0xff] %v2936_v57 }
0x1126 PF: > { %p3688_p13 = scmp.eq.s32.totalorder %s4342_s19, 1  ;;  %s4235_s2 = smov [#allocation14]  }
0x1127   : > { %s2959_s12 = sshll.u32 %s4235_s2, 4  ;;  %s2960_s12 = int_to_ptr.vmem [resolvable:$true] %s2959_s12 }
0x1128   : > { %s4129_s23 = scalar_lea.vmem %s2960_s12, 512  ;;  %p4136_p9 = scmp.lt.s32.totalorder %s2960_s12, %s2960_s12 }
0x1129   : > { %p4130_p2 = scmp.ne.s32.totalorder %s2960_s12, %s4129_s23  ;;  %p4137_p3 = scmp.lt.s32.totalorder %s4129_s23, %s4129_s23 }
0x112b   : > { %p4131_p5 = pnand %p4130_p2, %p3688_p13  ;;  %p4138_p4 = por %p4137_p3, %p4136_p9 }
0x112d   : > { %p4132_p7 = pneg %p4131_p5 }
0x112f   : > { %p4139_p11 = pnand %p4138_p4, %p4132_p7 }
0x1131   : > { %4142 = shalt.err (!%p4139_p11)
}
0x1132   : > { %s4236_s24 = smov 128   ;;  %s4237_s9 = smov 8  }
0x1133   : > { %s5026_s1 = sld [smem:[#allocation37_spill]] }
0x1139   : > { %3654 = dma.vmem_to_hbm [thread:$0]  (%p3688_p13), %s2960_s12, 512, %s5026_s1, [#allocation5], %s4236_s24, %s4236_s24, %s4237_s9  }
0x113a   : > { %4190 = dma.done.wait (%p3688_p13), [#allocation5], 512  }
0x113b   : > { %4192 = vsyncadd (%p3688_p13), [#allocation5], 4294966784 }
0x113c PF: > { %s5027_s5 = sld [smem:[#allocation20_spill]]  ;;  %s5030_s29 = smov %s4199_s30 }
0x113d   : > { %s5028_s8 = sld [smem:[#allocation22_spill]]  ;;  %s5031_s30 = smov %s4203_s15 }
0x113e   : > { %s5029_s26 = sld [smem:[#allocation21_spill]]  ;;  %s5033_s16 = smov %s4211_s17 }
0x1142   : > { %s27_s18 = sadd.s32 1, %s5027_s5  }
0x1143   : > { %p24_p10 = scmp.ge.s32.totalorder %s27_s18, 4   ;;  %s5032_s15 = smov %s5028_s8 }
0x1144   : > { %s5034_s17 = smov %s5029_s26 }
0x1145   :  { %26 = sbr.rel (!%p24_p10) target bundleno = 21 (0x15), region = 203 }
0x114a   :  { %2975 = vsyncpa [#allocation4], 1 }
0x114b   :  { %2977 = vsyncpa [#allocation4 + $0x1], 1 }
0x114c   :  { %2978 = vsyncpa [#allocation7], 1 }
0x114d   :  { %2979 = vsyncpa [#allocation5], 1 }
0x114e   :  { %2981 = vsyncpa [#allocation5 + $0x1], 1 }

</bundles_post_ra>
